<compile_context>
chip_gen: v5e
topology: v5e:2x2
jax: 0.10.0
libtpu: 0.0.40
codegen_flags: <defaults>
</compile_context>

<pallas_src>
import numpy as np
import jax
import jax.numpy as jnp
from jax.experimental import pallas as pl
from jax.experimental.pallas import tpu as pltpu

EPSILON = 1e-4
LOG1P_EPS = float(np.log1p(EPSILON))   # log(1 + EPSILON), folded into the epilogue

# ---- synthetic "cube" configuration (stand-in for softcube's 324-dim encoding) ----
NUM_STICKERS = 8
NUM_COLORS = 6
MATRIX_SIZE = NUM_STICKERS * NUM_COLORS          # move_matrix(...).shape[0] == 48
ALL_MOVES = [f"M{i}" for i in range(12)]         # synthetic move set
NUM_SOLVER_MOVES = 3                             # Solver.num_moves
BATCH = 2                                        # Solver.batch_size
LANE = 128                                       # per-move OUTPUT slab width (lane-aligned)


def identity_cubes_np(batch):
    """Solved-cube encoding: sticker i carries one-hot color i % NUM_COLORS."""
    eye = np.eye(NUM_COLORS, dtype=np.float32)
    cube = eye[np.arange(NUM_STICKERS) % NUM_COLORS].reshape(-1)
    return np.tile(cube[None, :], (batch, 1))


def move_matrix_np(move_idx):
    """Deterministic sticker-permutation matrix (MATRIX_SIZE x MATRIX_SIZE)."""
    rng = np.random.RandomState(1000 + move_idx)
    perm = rng.permutation(NUM_STICKERS)
    mat = np.zeros((MATRIX_SIZE, MATRIX_SIZE), dtype=np.float32)
    for i in range(NUM_STICKERS):
        j = int(perm[i])
        mat[i * NUM_COLORS:(i + 1) * NUM_COLORS,
            j * NUM_COLORS:(j + 1) * NUM_COLORS] = np.eye(NUM_COLORS, dtype=np.float32)
    return mat


def build_mats_wide(move_matrices_np):
    """One-time host-side constant: (S, M*LANE) with Mat_m in cols [m*LANE, m*LANE+S).

    Rows are NOT padded (K = S = 48); only each per-move output slab is padded to a
    full 128-lane width so in-kernel slab slices are vreg-aligned.
    """
    move_matrices_np = np.asarray(move_matrices_np, dtype=np.float32)
    M, S, _ = move_matrices_np.shape
    wide = np.zeros((S, M * LANE), dtype=np.float32)
    for m in range(M):
        wide[:, m * LANE:m * LANE + S] = move_matrices_np[m]
    return jnp.asarray(wide)


# --------------------------- Pallas kernel ---------------------------
def _solver_kernel(probs_ref,       # VMEM (T, bt, M)    f32 per-step move probabilities
                   mats_ref,        # VMEM (S, M*LANE)   f32 [Mat_0 | ... | Mat_{M-1}]
                   cubes_ref,       # VMEM (bt, S)       f32 initial cubes
                   ident_ref,       # VMEM (bt, S)       f32 identity cubes
                   out_cubes_ref,   # VMEM (bt, S)       f32 final cubes
                   loss_ref):       # VMEM (bt, 1)       f32 solution_loss
    T, _, M = probs_ref.shape
    S = cubes_ref.shape[1]

    probs = probs_ref[...]           # tiny; load once
    mats = mats_ref[...]
    state = cubes_ref[...]           # (bt, S) carried in vregs

    # TODO(synk): if T grows beyond ~16, switch this static unroll to
    # lax.fori_loop(..., unroll=True) over chunks to bound code size.
    for t in range(T):               # T is small & static -> fully unrolled
        # One wide MXU matmul: y[:, m*LANE:(m+1)*LANE] == state @ Mat_m for every m.
        y = jnp.dot(state, mats, preferred_element_type=jnp.float32)  # (bt, M*LANE)
        # MoveCombiner weighted sum over lane-aligned 128-wide slabs, tree-reduced.
        parts = [probs[t, :, m:m + 1] * y[:, m * LANE:(m + 1) * LANE] for m in range(M)]
        while len(parts) > 1:
            nxt = [parts[i] + parts[i + 1] for i in range(0, len(parts) - 1, 2)]
            if len(parts) % 2:
                nxt.append(parts[-1])
            parts = nxt
        # Slab columns S..LANE-1 are exact zeros; keep only the real S lanes
        # (free in-vreg lane mask, keeps the next dot's K at 48).
        state = parts[0][:, :S]

    # solution_loss: -sum(log((cubes+eps)/(1+eps)) * identity_cubes, axis=-1)
    log_probs = jnp.log(state + EPSILON) - LOG1P_EPS
    loss_ref[...] = -jnp.sum(log_probs * ident_ref[...], axis=-1, keepdims=True)
    out_cubes_ref[...] = state


def solver_losses(probs, mats_wide, cubes, identity):
    """
    probs:     (T, B, M)      f32 -- per-step move probabilities (Solver.forward())
    mats_wide: (S, M*LANE)    f32 -- precomputed constant from build_mats_wide()
    cubes:     (B, S)         f32 -- input cubes
    identity:  (B, S)         f32 -- identity_cubes(B)
    returns (losses (B,), final_cubes (B, S))
    """
    T, B, M = probs.shape
    S = cubes.shape[1]

    # Split large batches across a "parallel" leading grid axis (both TCs on v7x);
    # at small B this is a single invocation.
    bt = 128 if (B > 128 and B % 128 == 0) else B
    grid = (B // bt,)

    out_cubes, losses = pl.pallas_call(
        _solver_kernel,
        out_shape=(jax.ShapeDtypeStruct((B, S), jnp.float32),
                   jax.ShapeDtypeStruct((B, 1), jnp.float32)),
        grid=grid,
        in_specs=[
            pl.BlockSpec((T, bt, M), lambda i: (0, i, 0)),
            pl.BlockSpec((S, M * LANE), lambda i: (0, 0)),
            pl.BlockSpec((bt, S), lambda i: (i, 0)),
            pl.BlockSpec((bt, S), lambda i: (i, 0)),
        ],
        out_specs=(pl.BlockSpec((bt, S), lambda i: (i, 0)),
                   pl.BlockSpec((bt, 1), lambda i: (i, 0))),
        compiler_params=pltpu.CompilerParams(dimension_semantics=("parallel",)),
    )(probs, mats_wide, cubes, identity)

    return losses[:, 0], out_cubes


# Pure-JAX reference (mirrors the PyTorch module exactly)
def solver_losses_ref(probs, mats3, cubes, identity):
    M, S, _ = mats3.shape
    mats_flat = mats3.reshape(M, S * S)
    for t in range(probs.shape[0]):
        combined = (probs[t] @ mats_flat).reshape(-1, S, S)        # MoveCombiner
        cubes = jnp.matmul(cubes[:, None, :], combined)[:, 0]      # apply_solutions
    log_probs = jnp.log((cubes + EPSILON) / (1.0 + EPSILON))
    return -jnp.sum(log_probs * identity, axis=-1), cubes


if __name__ == "__main__":
    key = jax.random.PRNGKey(0)
    T, B, M, S = NUM_SOLVER_MOVES, BATCH, len(ALL_MOVES), MATRIX_SIZE

    # TODO(synk): Solver.probabilities() is abstract (raises NotImplementedError);
    # use deterministic softmax logits as a concrete stand-in.
    logits = jax.random.normal(key, (T, B, M), dtype=jnp.float32)
    probs = jax.nn.softmax(logits, axis=-1)

    move_mats_np = np.stack([move_matrix_np(i) for i in range(M)])   # (M, S, S)
    move_mats = jnp.asarray(move_mats_np)
    identity = jnp.asarray(identity_cubes_np(B))                     # (B, S)

    # Constant kernel operand, built once (hoisted out of the per-call path).
    mats_wide = build_mats_wide(move_mats_np)                        # (S, M*LANE)

    # Input cubes: solved cubes scrambled by a couple of hard moves.
    cubes = identity @ move_mats[1]
    cubes = cubes @ move_mats[4]

    solver_jit = jax.jit(solver_losses)
    losses, final_cubes = jax.block_until_ready(
        solver_jit(probs, mats_wide, cubes, identity))

    ref_losses, ref_cubes = solver_losses_ref(probs, move_mats, cubes, identity)
    assert jnp.allclose(losses, ref_losses, rtol=1e-3, atol=1e-3)
    assert jnp.allclose(final_cubes, ref_cubes, rtol=1e-3, atol=1e-3)
    print("KERNEL_OK")
</pallas_src>

<mosaic_0001>
module attributes {stable_mosaic.version = 11 : i64} {
  func.func @_solver_kernel(%arg0: i32, %arg1: memref<3x2x12xf32, #tpu.memory_space<vmem>>, %arg2: memref<48x1536xf32, #tpu.memory_space<vmem>>, %arg3: memref<2x48xf32, #tpu.memory_space<vmem>>, %arg4: memref<2x48xf32, #tpu.memory_space<vmem>>, %arg5: memref<2x48xf32, #tpu.memory_space<vmem>>, %arg6: memref<2x1xf32, #tpu.memory_space<vmem>>) attributes {dimension_semantics = [#tpu.dimension_semantics<parallel>], iteration_bounds = array<i64: 1>, scalar_prefetch = 0 : i64, scratch_operands = 0 : i64, tpu.core_type = #tpu.core_type<tc>, window_params = [{transform_indices = @transform_0, window_bounds = array<i64: 3, 2, 12>}, {pipeline_mode = #tpu.pipeline_mode<synchronous>, transform_indices = @transform_1, window_bounds = array<i64: 48, 1536>}, {transform_indices = @transform_2, window_bounds = array<i64: 2, 48>}, {transform_indices = @transform_3, window_bounds = array<i64: 2, 48>}, {transform_indices = @transform_4, window_bounds = array<i64: 2, 48>}, {transform_indices = @transform_5, window_bounds = array<i64: 2, 1>}]} {
    %c0 = arith.constant 0 : index
    %c0_0 = arith.constant 0 : index
    %c0_1 = arith.constant 0 : index
    %0 = vector.load %arg1[%c0, %c0_0, %c0_1] : memref<3x2x12xf32, #tpu.memory_space<vmem>>, vector<3x2x12xf32>
    %c0_2 = arith.constant 0 : index
    %c0_3 = arith.constant 0 : index
    %1 = vector.load %arg2[%c0_2, %c0_3] : memref<48x1536xf32, #tpu.memory_space<vmem>>, vector<48x1536xf32>
    %c0_4 = arith.constant 0 : index
    %c0_5 = arith.constant 0 : index
    %2 = vector.load %arg3[%c0_4, %c0_5] : memref<2x48xf32, #tpu.memory_space<vmem>>, vector<2x48xf32>
    %cst = arith.constant dense<0.000000e+00> : vector<2x1536xf32>
    %3 = tpu.matmul %2, %1, %cst {dimension_numbers = #tpu.dot_dimension_numbers<[1], [0], [0], [1], [0, 0, 1, 1], [], []>} : vector<2x48xf32>, vector<48x1536xf32>, vector<2x1536xf32> -> vector<2x1536xf32>
    %4 = vector.extract_strided_slice %0 {offsets = [0, 0, 0], sizes = [1, 2, 1], strides = [1, 1, 1]} : vector<3x2x12xf32> to vector<1x2x1xf32>
    %5 = vector.shape_cast %4 : vector<1x2x1xf32> to vector<2x1xf32>
    %6 = vector.extract_strided_slice %3 {offsets = [0, 0], sizes = [2, 128], strides = [1, 1]} : vector<2x1536xf32> to vector<2x128xf32>
    %7 = vector.broadcast %5 : vector<2x1xf32> to vector<2x128xf32>
    %8 = arith.mulf %7, %6 : vector<2x128xf32>
    %9 = vector.extract_strided_slice %0 {offsets = [0, 0, 1], sizes = [1, 2, 1], strides = [1, 1, 1]} : vector<3x2x12xf32> to vector<1x2x1xf32>
    %10 = vector.shape_cast %9 : vector<1x2x1xf32> to vector<2x1xf32>
    %11 = vector.extract_strided_slice %3 {offsets = [0, 128], sizes = [2, 128], strides = [1, 1]} : vector<2x1536xf32> to vector<2x128xf32>
    %12 = vector.broadcast %10 : vector<2x1xf32> to vector<2x128xf32>
    %13 = arith.mulf %12, %11 : vector<2x128xf32>
    %14 = vector.extract_strided_slice %0 {offsets = [0, 0, 2], sizes = [1, 2, 1], strides = [1, 1, 1]} : vector<3x2x12xf32> to vector<1x2x1xf32>
    %15 = vector.shape_cast %14 : vector<1x2x1xf32> to vector<2x1xf32>
    %16 = vector.extract_strided_slice %3 {offsets = [0, 256], sizes = [2, 128], strides = [1, 1]} : vector<2x1536xf32> to vector<2x128xf32>
    %17 = vector.broadcast %15 : vector<2x1xf32> to vector<2x128xf32>
    %18 = arith.mulf %17, %16 : vector<2x128xf32>
    %19 = vector.extract_strided_slice %0 {offsets = [0, 0, 3], sizes = [1, 2, 1], strides = [1, 1, 1]} : vector<3x2x12xf32> to vector<1x2x1xf32>
    %20 = vector.shape_cast %19 : vector<1x2x1xf32> to vector<2x1xf32>
    %21 = vector.extract_strided_slice %3 {offsets = [0, 384], sizes = [2, 128], strides = [1, 1]} : vector<2x1536xf32> to vector<2x128xf32>
    %22 = vector.broadcast %20 : vector<2x1xf32> to vector<2x128xf32>
    %23 = arith.mulf %22, %21 : vector<2x128xf32>
    %24 = vector.extract_strided_slice %0 {offsets = [0, 0, 4], sizes = [1, 2, 1], strides = [1, 1, 1]} : vector<3x2x12xf32> to vector<1x2x1xf32>
    %25 = vector.shape_cast %24 : vector<1x2x1xf32> to vector<2x1xf32>
    %26 = vector.extract_strided_slice %3 {offsets = [0, 512], sizes = [2, 128], strides = [1, 1]} : vector<2x1536xf32> to vector<2x128xf32>
    %27 = vector.broadcast %25 : vector<2x1xf32> to vector<2x128xf32>
    %28 = arith.mulf %27, %26 : vector<2x128xf32>
    %29 = vector.extract_strided_slice %0 {offsets = [0, 0, 5], sizes = [1, 2, 1], strides = [1, 1, 1]} : vector<3x2x12xf32> to vector<1x2x1xf32>
    %30 = vector.shape_cast %29 : vector<1x2x1xf32> to vector<2x1xf32>
    %31 = vector.extract_strided_slice %3 {offsets = [0, 640], sizes = [2, 128], strides = [1, 1]} : vector<2x1536xf32> to vector<2x128xf32>
    %32 = vector.broadcast %30 : vector<2x1xf32> to vector<2x128xf32>
    %33 = arith.mulf %32, %31 : vector<2x128xf32>
    %34 = vector.extract_strided_slice %0 {offsets = [0, 0, 6], sizes = [1, 2, 1], strides = [1, 1, 1]} : vector<3x2x12xf32> to vector<1x2x1xf32>
    %35 = vector.shape_cast %34 : vector<1x2x1xf32> to vector<2x1xf32>
    %36 = vector.extract_strided_slice %3 {offsets = [0, 768], sizes = [2, 128], strides = [1, 1]} : vector<2x1536xf32> to vector<2x128xf32>
    %37 = vector.broadcast %35 : vector<2x1xf32> to vector<2x128xf32>
    %38 = arith.mulf %37, %36 : vector<2x128xf32>
    %39 = vector.extract_strided_slice %0 {offsets = [0, 0, 7], sizes = [1, 2, 1], strides = [1, 1, 1]} : vector<3x2x12xf32> to vector<1x2x1xf32>
    %40 = vector.shape_cast %39 : vector<1x2x1xf32> to vector<2x1xf32>
    %41 = vector.extract_strided_slice %3 {offsets = [0, 896], sizes = [2, 128], strides = [1, 1]} : vector<2x1536xf32> to vector<2x128xf32>
    %42 = vector.broadcast %40 : vector<2x1xf32> to vector<2x128xf32>
    %43 = arith.mulf %42, %41 : vector<2x128xf32>
    %44 = vector.extract_strided_slice %0 {offsets = [0, 0, 8], sizes = [1, 2, 1], strides = [1, 1, 1]} : vector<3x2x12xf32> to vector<1x2x1xf32>
    %45 = vector.shape_cast %44 : vector<1x2x1xf32> to vector<2x1xf32>
    %46 = vector.extract_strided_slice %3 {offsets = [0, 1024], sizes = [2, 128], strides = [1, 1]} : vector<2x1536xf32> to vector<2x128xf32>
    %47 = vector.broadcast %45 : vector<2x1xf32> to vector<2x128xf32>
    %48 = arith.mulf %47, %46 : vector<2x128xf32>
    %49 = vector.extract_strided_slice %0 {offsets = [0, 0, 9], sizes = [1, 2, 1], strides = [1, 1, 1]} : vector<3x2x12xf32> to vector<1x2x1xf32>
    %50 = vector.shape_cast %49 : vector<1x2x1xf32> to vector<2x1xf32>
    %51 = vector.extract_strided_slice %3 {offsets = [0, 1152], sizes = [2, 128], strides = [1, 1]} : vector<2x1536xf32> to vector<2x128xf32>
    %52 = vector.broadcast %50 : vector<2x1xf32> to vector<2x128xf32>
    %53 = arith.mulf %52, %51 : vector<2x128xf32>
    %54 = vector.extract_strided_slice %0 {offsets = [0, 0, 10], sizes = [1, 2, 1], strides = [1, 1, 1]} : vector<3x2x12xf32> to vector<1x2x1xf32>
    %55 = vector.shape_cast %54 : vector<1x2x1xf32> to vector<2x1xf32>
    %56 = vector.extract_strided_slice %3 {offsets = [0, 1280], sizes = [2, 128], strides = [1, 1]} : vector<2x1536xf32> to vector<2x128xf32>
    %57 = vector.broadcast %55 : vector<2x1xf32> to vector<2x128xf32>
    %58 = arith.mulf %57, %56 : vector<2x128xf32>
    %59 = vector.extract_strided_slice %0 {offsets = [0, 0, 11], sizes = [1, 2, 1], strides = [1, 1, 1]} : vector<3x2x12xf32> to vector<1x2x1xf32>
    %60 = vector.shape_cast %59 : vector<1x2x1xf32> to vector<2x1xf32>
    %61 = vector.extract_strided_slice %3 {offsets = [0, 1408], sizes = [2, 128], strides = [1, 1]} : vector<2x1536xf32> to vector<2x128xf32>
    %62 = vector.broadcast %60 : vector<2x1xf32> to vector<2x128xf32>
    %63 = arith.mulf %62, %61 : vector<2x128xf32>
    %64 = arith.addf %8, %13 : vector<2x128xf32>
    %65 = arith.addf %18, %23 : vector<2x128xf32>
    %66 = arith.addf %28, %33 : vector<2x128xf32>
    %67 = arith.addf %38, %43 : vector<2x128xf32>
    %68 = arith.addf %48, %53 : vector<2x128xf32>
    %69 = arith.addf %58, %63 : vector<2x128xf32>
    %70 = arith.addf %64, %65 : vector<2x128xf32>
    %71 = arith.addf %66, %67 : vector<2x128xf32>
    %72 = arith.addf %68, %69 : vector<2x128xf32>
    %73 = arith.addf %70, %71 : vector<2x128xf32>
    %74 = arith.addf %73, %72 : vector<2x128xf32>
    %75 = vector.extract_strided_slice %74 {offsets = [0, 0], sizes = [2, 48], strides = [1, 1]} : vector<2x128xf32> to vector<2x48xf32>
    %cst_6 = arith.constant dense<0.000000e+00> : vector<2x1536xf32>
    %76 = tpu.matmul %75, %1, %cst_6 {dimension_numbers = #tpu.dot_dimension_numbers<[1], [0], [0], [1], [0, 0, 1, 1], [], []>} : vector<2x48xf32>, vector<48x1536xf32>, vector<2x1536xf32> -> vector<2x1536xf32>
    %77 = vector.extract_strided_slice %0 {offsets = [1, 0, 0], sizes = [1, 2, 1], strides = [1, 1, 1]} : vector<3x2x12xf32> to vector<1x2x1xf32>
    %78 = vector.shape_cast %77 : vector<1x2x1xf32> to vector<2x1xf32>
    %79 = vector.extract_strided_slice %76 {offsets = [0, 0], sizes = [2, 128], strides = [1, 1]} : vector<2x1536xf32> to vector<2x128xf32>
    %80 = vector.broadcast %78 : vector<2x1xf32> to vector<2x128xf32>
    %81 = arith.mulf %80, %79 : vector<2x128xf32>
    %82 = vector.extract_strided_slice %0 {offsets = [1, 0, 1], sizes = [1, 2, 1], strides = [1, 1, 1]} : vector<3x2x12xf32> to vector<1x2x1xf32>
    %83 = vector.shape_cast %82 : vector<1x2x1xf32> to vector<2x1xf32>
    %84 = vector.extract_strided_slice %76 {offsets = [0, 128], sizes = [2, 128], strides = [1, 1]} : vector<2x1536xf32> to vector<2x128xf32>
    %85 = vector.broadcast %83 : vector<2x1xf32> to vector<2x128xf32>
    %86 = arith.mulf %85, %84 : vector<2x128xf32>
    %87 = vector.extract_strided_slice %0 {offsets = [1, 0, 2], sizes = [1, 2, 1], strides = [1, 1, 1]} : vector<3x2x12xf32> to vector<1x2x1xf32>
    %88 = vector.shape_cast %87 : vector<1x2x1xf32> to vector<2x1xf32>
    %89 = vector.extract_strided_slice %76 {offsets = [0, 256], sizes = [2, 128], strides = [1, 1]} : vector<2x1536xf32> to vector<2x128xf32>
    %90 = vector.broadcast %88 : vector<2x1xf32> to vector<2x128xf32>
    %91 = arith.mulf %90, %89 : vector<2x128xf32>
    %92 = vector.extract_strided_slice %0 {offsets = [1, 0, 3], sizes = [1, 2, 1], strides = [1, 1, 1]} : vector<3x2x12xf32> to vector<1x2x1xf32>
    %93 = vector.shape_cast %92 : vector<1x2x1xf32> to vector<2x1xf32>
    %94 = vector.extract_strided_slice %76 {offsets = [0, 384], sizes = [2, 128], strides = [1, 1]} : vector<2x1536xf32> to vector<2x128xf32>
    %95 = vector.broadcast %93 : vector<2x1xf32> to vector<2x128xf32>
    %96 = arith.mulf %95, %94 : vector<2x128xf32>
    %97 = vector.extract_strided_slice %0 {offsets = [1, 0, 4], sizes = [1, 2, 1], strides = [1, 1, 1]} : vector<3x2x12xf32> to vector<1x2x1xf32>
    %98 = vector.shape_cast %97 : vector<1x2x1xf32> to vector<2x1xf32>
    %99 = vector.extract_strided_slice %76 {offsets = [0, 512], sizes = [2, 128], strides = [1, 1]} : vector<2x1536xf32> to vector<2x128xf32>
    %100 = vector.broadcast %98 : vector<2x1xf32> to vector<2x128xf32>
    %101 = arith.mulf %100, %99 : vector<2x128xf32>
    %102 = vector.extract_strided_slice %0 {offsets = [1, 0, 5], sizes = [1, 2, 1], strides = [1, 1, 1]} : vector<3x2x12xf32> to vector<1x2x1xf32>
    %103 = vector.shape_cast %102 : vector<1x2x1xf32> to vector<2x1xf32>
    %104 = vector.extract_strided_slice %76 {offsets = [0, 640], sizes = [2, 128], strides = [1, 1]} : vector<2x1536xf32> to vector<2x128xf32>
    %105 = vector.broadcast %103 : vector<2x1xf32> to vector<2x128xf32>
    %106 = arith.mulf %105, %104 : vector<2x128xf32>
    %107 = vector.extract_strided_slice %0 {offsets = [1, 0, 6], sizes = [1, 2, 1], strides = [1, 1, 1]} : vector<3x2x12xf32> to vector<1x2x1xf32>
    %108 = vector.shape_cast %107 : vector<1x2x1xf32> to vector<2x1xf32>
    %109 = vector.extract_strided_slice %76 {offsets = [0, 768], sizes = [2, 128], strides = [1, 1]} : vector<2x1536xf32> to vector<2x128xf32>
    %110 = vector.broadcast %108 : vector<2x1xf32> to vector<2x128xf32>
    %111 = arith.mulf %110, %109 : vector<2x128xf32>
    %112 = vector.extract_strided_slice %0 {offsets = [1, 0, 7], sizes = [1, 2, 1], strides = [1, 1, 1]} : vector<3x2x12xf32> to vector<1x2x1xf32>
    %113 = vector.shape_cast %112 : vector<1x2x1xf32> to vector<2x1xf32>
    %114 = vector.extract_strided_slice %76 {offsets = [0, 896], sizes = [2, 128], strides = [1, 1]} : vector<2x1536xf32> to vector<2x128xf32>
    %115 = vector.broadcast %113 : vector<2x1xf32> to vector<2x128xf32>
    %116 = arith.mulf %115, %114 : vector<2x128xf32>
    %117 = vector.extract_strided_slice %0 {offsets = [1, 0, 8], sizes = [1, 2, 1], strides = [1, 1, 1]} : vector<3x2x12xf32> to vector<1x2x1xf32>
    %118 = vector.shape_cast %117 : vector<1x2x1xf32> to vector<2x1xf32>
    %119 = vector.extract_strided_slice %76 {offsets = [0, 1024], sizes = [2, 128], strides = [1, 1]} : vector<2x1536xf32> to vector<2x128xf32>
    %120 = vector.broadcast %118 : vector<2x1xf32> to vector<2x128xf32>
    %121 = arith.mulf %120, %119 : vector<2x128xf32>
    %122 = vector.extract_strided_slice %0 {offsets = [1, 0, 9], sizes = [1, 2, 1], strides = [1, 1, 1]} : vector<3x2x12xf32> to vector<1x2x1xf32>
    %123 = vector.shape_cast %122 : vector<1x2x1xf32> to vector<2x1xf32>
    %124 = vector.extract_strided_slice %76 {offsets = [0, 1152], sizes = [2, 128], strides = [1, 1]} : vector<2x1536xf32> to vector<2x128xf32>
    %125 = vector.broadcast %123 : vector<2x1xf32> to vector<2x128xf32>
    %126 = arith.mulf %125, %124 : vector<2x128xf32>
    %127 = vector.extract_strided_slice %0 {offsets = [1, 0, 10], sizes = [1, 2, 1], strides = [1, 1, 1]} : vector<3x2x12xf32> to vector<1x2x1xf32>
    %128 = vector.shape_cast %127 : vector<1x2x1xf32> to vector<2x1xf32>
    %129 = vector.extract_strided_slice %76 {offsets = [0, 1280], sizes = [2, 128], strides = [1, 1]} : vector<2x1536xf32> to vector<2x128xf32>
    %130 = vector.broadcast %128 : vector<2x1xf32> to vector<2x128xf32>
    %131 = arith.mulf %130, %129 : vector<2x128xf32>
    %132 = vector.extract_strided_slice %0 {offsets = [1, 0, 11], sizes = [1, 2, 1], strides = [1, 1, 1]} : vector<3x2x12xf32> to vector<1x2x1xf32>
    %133 = vector.shape_cast %132 : vector<1x2x1xf32> to vector<2x1xf32>
    %134 = vector.extract_strided_slice %76 {offsets = [0, 1408], sizes = [2, 128], strides = [1, 1]} : vector<2x1536xf32> to vector<2x128xf32>
    %135 = vector.broadcast %133 : vector<2x1xf32> to vector<2x128xf32>
    %136 = arith.mulf %135, %134 : vector<2x128xf32>
    %137 = arith.addf %81, %86 : vector<2x128xf32>
    %138 = arith.addf %91, %96 : vector<2x128xf32>
    %139 = arith.addf %101, %106 : vector<2x128xf32>
    %140 = arith.addf %111, %116 : vector<2x128xf32>
    %141 = arith.addf %121, %126 : vector<2x128xf32>
    %142 = arith.addf %131, %136 : vector<2x128xf32>
    %143 = arith.addf %137, %138 : vector<2x128xf32>
    %144 = arith.addf %139, %140 : vector<2x128xf32>
    %145 = arith.addf %141, %142 : vector<2x128xf32>
    %146 = arith.addf %143, %144 : vector<2x128xf32>
    %147 = arith.addf %146, %145 : vector<2x128xf32>
    %148 = vector.extract_strided_slice %147 {offsets = [0, 0], sizes = [2, 48], strides = [1, 1]} : vector<2x128xf32> to vector<2x48xf32>
    %cst_7 = arith.constant dense<0.000000e+00> : vector<2x1536xf32>
    %149 = tpu.matmul %148, %1, %cst_7 {dimension_numbers = #tpu.dot_dimension_numbers<[1], [0], [0], [1], [0, 0, 1, 1], [], []>} : vector<2x48xf32>, vector<48x1536xf32>, vector<2x1536xf32> -> vector<2x1536xf32>
    %150 = vector.extract_strided_slice %0 {offsets = [2, 0, 0], sizes = [1, 2, 1], strides = [1, 1, 1]} : vector<3x2x12xf32> to vector<1x2x1xf32>
    %151 = vector.shape_cast %150 : vector<1x2x1xf32> to vector<2x1xf32>
    %152 = vector.extract_strided_slice %149 {offsets = [0, 0], sizes = [2, 128], strides = [1, 1]} : vector<2x1536xf32> to vector<2x128xf32>
    %153 = vector.broadcast %151 : vector<2x1xf32> to vector<2x128xf32>
    %154 = arith.mulf %153, %152 : vector<2x128xf32>
    %155 = vector.extract_strided_slice %0 {offsets = [2, 0, 1], sizes = [1, 2, 1], strides = [1, 1, 1]} : vector<3x2x12xf32> to vector<1x2x1xf32>
    %156 = vector.shape_cast %155 : vector<1x2x1xf32> to vector<2x1xf32>
    %157 = vector.extract_strided_slice %149 {offsets = [0, 128], sizes = [2, 128], strides = [1, 1]} : vector<2x1536xf32> to vector<2x128xf32>
    %158 = vector.broadcast %156 : vector<2x1xf32> to vector<2x128xf32>
    %159 = arith.mulf %158, %157 : vector<2x128xf32>
    %160 = vector.extract_strided_slice %0 {offsets = [2, 0, 2], sizes = [1, 2, 1], strides = [1, 1, 1]} : vector<3x2x12xf32> to vector<1x2x1xf32>
    %161 = vector.shape_cast %160 : vector<1x2x1xf32> to vector<2x1xf32>
    %162 = vector.extract_strided_slice %149 {offsets = [0, 256], sizes = [2, 128], strides = [1, 1]} : vector<2x1536xf32> to vector<2x128xf32>
    %163 = vector.broadcast %161 : vector<2x1xf32> to vector<2x128xf32>
    %164 = arith.mulf %163, %162 : vector<2x128xf32>
    %165 = vector.extract_strided_slice %0 {offsets = [2, 0, 3], sizes = [1, 2, 1], strides = [1, 1, 1]} : vector<3x2x12xf32> to vector<1x2x1xf32>
    %166 = vector.shape_cast %165 : vector<1x2x1xf32> to vector<2x1xf32>
    %167 = vector.extract_strided_slice %149 {offsets = [0, 384], sizes = [2, 128], strides = [1, 1]} : vector<2x1536xf32> to vector<2x128xf32>
    %168 = vector.broadcast %166 : vector<2x1xf32> to vector<2x128xf32>
    %169 = arith.mulf %168, %167 : vector<2x128xf32>
    %170 = vector.extract_strided_slice %0 {offsets = [2, 0, 4], sizes = [1, 2, 1], strides = [1, 1, 1]} : vector<3x2x12xf32> to vector<1x2x1xf32>
    %171 = vector.shape_cast %170 : vector<1x2x1xf32> to vector<2x1xf32>
    %172 = vector.extract_strided_slice %149 {offsets = [0, 512], sizes = [2, 128], strides = [1, 1]} : vector<2x1536xf32> to vector<2x128xf32>
    %173 = vector.broadcast %171 : vector<2x1xf32> to vector<2x128xf32>
    %174 = arith.mulf %173, %172 : vector<2x128xf32>
    %175 = vector.extract_strided_slice %0 {offsets = [2, 0, 5], sizes = [1, 2, 1], strides = [1, 1, 1]} : vector<3x2x12xf32> to vector<1x2x1xf32>
    %176 = vector.shape_cast %175 : vector<1x2x1xf32> to vector<2x1xf32>
    %177 = vector.extract_strided_slice %149 {offsets = [0, 640], sizes = [2, 128], strides = [1, 1]} : vector<2x1536xf32> to vector<2x128xf32>
    %178 = vector.broadcast %176 : vector<2x1xf32> to vector<2x128xf32>
    %179 = arith.mulf %178, %177 : vector<2x128xf32>
    %180 = vector.extract_strided_slice %0 {offsets = [2, 0, 6], sizes = [1, 2, 1], strides = [1, 1, 1]} : vector<3x2x12xf32> to vector<1x2x1xf32>
    %181 = vector.shape_cast %180 : vector<1x2x1xf32> to vector<2x1xf32>
    %182 = vector.extract_strided_slice %149 {offsets = [0, 768], sizes = [2, 128], strides = [1, 1]} : vector<2x1536xf32> to vector<2x128xf32>
    %183 = vector.broadcast %181 : vector<2x1xf32> to vector<2x128xf32>
    %184 = arith.mulf %183, %182 : vector<2x128xf32>
    %185 = vector.extract_strided_slice %0 {offsets = [2, 0, 7], sizes = [1, 2, 1], strides = [1, 1, 1]} : vector<3x2x12xf32> to vector<1x2x1xf32>
    %186 = vector.shape_cast %185 : vector<1x2x1xf32> to vector<2x1xf32>
    %187 = vector.extract_strided_slice %149 {offsets = [0, 896], sizes = [2, 128], strides = [1, 1]} : vector<2x1536xf32> to vector<2x128xf32>
    %188 = vector.broadcast %186 : vector<2x1xf32> to vector<2x128xf32>
    %189 = arith.mulf %188, %187 : vector<2x128xf32>
    %190 = vector.extract_strided_slice %0 {offsets = [2, 0, 8], sizes = [1, 2, 1], strides = [1, 1, 1]} : vector<3x2x12xf32> to vector<1x2x1xf32>
    %191 = vector.shape_cast %190 : vector<1x2x1xf32> to vector<2x1xf32>
    %192 = vector.extract_strided_slice %149 {offsets = [0, 1024], sizes = [2, 128], strides = [1, 1]} : vector<2x1536xf32> to vector<2x128xf32>
    %193 = vector.broadcast %191 : vector<2x1xf32> to vector<2x128xf32>
    %194 = arith.mulf %193, %192 : vector<2x128xf32>
    %195 = vector.extract_strided_slice %0 {offsets = [2, 0, 9], sizes = [1, 2, 1], strides = [1, 1, 1]} : vector<3x2x12xf32> to vector<1x2x1xf32>
    %196 = vector.shape_cast %195 : vector<1x2x1xf32> to vector<2x1xf32>
    %197 = vector.extract_strided_slice %149 {offsets = [0, 1152], sizes = [2, 128], strides = [1, 1]} : vector<2x1536xf32> to vector<2x128xf32>
    %198 = vector.broadcast %196 : vector<2x1xf32> to vector<2x128xf32>
    %199 = arith.mulf %198, %197 : vector<2x128xf32>
    %200 = vector.extract_strided_slice %0 {offsets = [2, 0, 10], sizes = [1, 2, 1], strides = [1, 1, 1]} : vector<3x2x12xf32> to vector<1x2x1xf32>
    %201 = vector.shape_cast %200 : vector<1x2x1xf32> to vector<2x1xf32>
    %202 = vector.extract_strided_slice %149 {offsets = [0, 1280], sizes = [2, 128], strides = [1, 1]} : vector<2x1536xf32> to vector<2x128xf32>
    %203 = vector.broadcast %201 : vector<2x1xf32> to vector<2x128xf32>
    %204 = arith.mulf %203, %202 : vector<2x128xf32>
    %205 = vector.extract_strided_slice %0 {offsets = [2, 0, 11], sizes = [1, 2, 1], strides = [1, 1, 1]} : vector<3x2x12xf32> to vector<1x2x1xf32>
    %206 = vector.shape_cast %205 : vector<1x2x1xf32> to vector<2x1xf32>
    %207 = vector.extract_strided_slice %149 {offsets = [0, 1408], sizes = [2, 128], strides = [1, 1]} : vector<2x1536xf32> to vector<2x128xf32>
    %208 = vector.broadcast %206 : vector<2x1xf32> to vector<2x128xf32>
    %209 = arith.mulf %208, %207 : vector<2x128xf32>
    %210 = arith.addf %154, %159 : vector<2x128xf32>
    %211 = arith.addf %164, %169 : vector<2x128xf32>
    %212 = arith.addf %174, %179 : vector<2x128xf32>
    %213 = arith.addf %184, %189 : vector<2x128xf32>
    %214 = arith.addf %194, %199 : vector<2x128xf32>
    %215 = arith.addf %204, %209 : vector<2x128xf32>
    %216 = arith.addf %210, %211 : vector<2x128xf32>
    %217 = arith.addf %212, %213 : vector<2x128xf32>
    %218 = arith.addf %214, %215 : vector<2x128xf32>
    %219 = arith.addf %216, %217 : vector<2x128xf32>
    %220 = arith.addf %219, %218 : vector<2x128xf32>
    %221 = vector.extract_strided_slice %220 {offsets = [0, 0], sizes = [2, 48], strides = [1, 1]} : vector<2x128xf32> to vector<2x48xf32>
    %cst_8 = arith.constant 9.99999974E-5 : f32
    %222 = vector.broadcast %cst_8 : f32 to vector<2x48xf32>
    %223 = arith.addf %221, %222 : vector<2x48xf32>
    %224 = math.log %223 : vector<2x48xf32>
    %cst_9 = arith.constant 9.99949988E-5 : f32
    %225 = vector.broadcast %cst_9 : f32 to vector<2x48xf32>
    %226 = arith.subf %224, %225 : vector<2x48xf32>
    %c0_10 = arith.constant 0 : index
    %c0_11 = arith.constant 0 : index
    %227 = vector.load %arg4[%c0_10, %c0_11] : memref<2x48xf32, #tpu.memory_space<vmem>>, vector<2x48xf32>
    %228 = arith.mulf %226, %227 : vector<2x48xf32>
    %cst_12 = arith.constant dense<0.000000e+00> : vector<2xf32>
    %229 = vector.multi_reduction <add>, %228, %cst_12 [1] : vector<2x48xf32> to vector<2xf32>
    %230 = vector.shape_cast %229 : vector<2xf32> to vector<2x1xf32>
    %cst_13 = arith.constant 0.000000e+00 : f32
    %231 = vector.broadcast %cst_13 : f32 to vector<2x1xf32>
    %232 = arith.subf %231, %230 : vector<2x1xf32>
    %c0_14 = arith.constant 0 : index
    %c0_15 = arith.constant 0 : index
    %233 = vector.load %arg6[%c0_14, %c0_15] : memref<2x1xf32, #tpu.memory_space<vmem>>, vector<2x1xf32>
    tpu.vector_store %arg6[%c0_14, %c0_15], %232 {strides = array<i32>} : memref<2x1xf32, #tpu.memory_space<vmem>>, vector<2x1xf32>,
    %c0_16 = arith.constant 0 : index
    %c0_17 = arith.constant 0 : index
    %234 = vector.load %arg5[%c0_16, %c0_17] : memref<2x48xf32, #tpu.memory_space<vmem>>, vector<2x48xf32>
    tpu.vector_store %arg5[%c0_16, %c0_17], %221 {strides = array<i32>} : memref<2x48xf32, #tpu.memory_space<vmem>>, vector<2x48xf32>,
    return
  }
  func.func @transform_0(%arg0: i32) -> (i32, i32, i32) {
    %c0_i32 = arith.constant 0 : i32
    %c0_i32_0 = arith.constant 0 : i32
    %c0_i32_1 = arith.constant 0 : i32
    return %c0_i32, %arg0, %c0_i32_0 : i32, i32, i32
  }
  func.func @transform_1(%arg0: i32) -> (i32, i32) {
    %c0_i32 = arith.constant 0 : i32
    %c0_i32_0 = arith.constant 0 : i32
    %c0_i32_1 = arith.constant 0 : i32
    return %c0_i32, %c0_i32_0 : i32, i32
  }
  func.func @transform_2(%arg0: i32) -> (i32, i32) {
    %c0_i32 = arith.constant 0 : i32
    %c0_i32_0 = arith.constant 0 : i32
    return %arg0, %c0_i32 : i32, i32
  }
  func.func @transform_3(%arg0: i32) -> (i32, i32) {
    %c0_i32 = arith.constant 0 : i32
    %c0_i32_0 = arith.constant 0 : i32
    return %arg0, %c0_i32 : i32, i32
  }
  func.func @transform_4(%arg0: i32) -> (i32, i32) {
    %c0_i32 = arith.constant 0 : i32
    %c0_i32_0 = arith.constant 0 : i32
    return %arg0, %c0_i32 : i32, i32
  }
  func.func @transform_5(%arg0: i32) -> (i32, i32) {
    %c0_i32 = arith.constant 0 : i32
    %c0_i32_0 = arith.constant 0 : i32
    return %arg0, %c0_i32 : i32, i32
  }
}

</mosaic_0001>

<bundles_post_ra>
// kernel: solver_losses.1
= control target key start
LH: loop header
LB: loop body
LE: loop exit
PB: predicated region body
PF: predicated region fallthrough
CT: control target
= control target key end

     0   :  { %11 = vsyncpa [#allocation3], 0  ;;  %s1880_s0 = inlined_call_operand.hbm [shape: f32[3,2,12], index: 0, kind: input, shape index: {}]   ;;  %s1881_s1 = inlined_call_operand.hbm [shape: f32[48,1536], index: 1, kind: input, shape index: {}]   ;;  %s1882_s2 = inlined_call_operand.hbm [shape: f32[2,48], index: 2, kind: input, shape index: {}]   ;;  %s1883_s3 = inlined_call_operand.vmem [shape: f32[2,48], index: 3, kind: input, shape index: {}]   ;;  %s1884_s4 = inlined_call_operand.hbm [shape: f32[2,48], index: 4, kind: output, shape index: {0}]   ;;  %s1885_s5 = inlined_call_operand.vmem [shape: f32[2,1], index: 5, kind: output, shape index: {1}]  }
   0x1   :  { %12 = vsyncpa [#allocation6], 0  ;;  %s31_s20 = sshll.u32 %s1881_s1, 4  ;;  %s32_s20 = int_to_ptr.hbm [resolvable:$true] %s31_s20 }
   0x2   :  { %13 = vsyncpa [#allocation4], 0  ;;  %s1321_s21 = smov [#allocation5]   ;;  %s18_s25 = sshll.u32 %s1880_s0, 4  ;;  %s19_s25 = int_to_ptr.hbm [resolvable:$true] %s18_s25 }
   0x3   :  { %s33_s22 = sshll.u32 %s1321_s21, 4  ;;  %s1322_s26 = smov 1536   ;;  %s34_s22 = int_to_ptr.vmem [resolvable:$true] %s33_s22 }
   0x4   :  { %s1323_s27 = smov 96   ;;  %s1324_s28 = smov [#allocation2]  }
   0x5   :  { %39 = dma.hbm_to_vmem [thread:$0]  %s32_s20, 9216, %s34_s22, [#allocation6], %s1322_s26, %s1322_s26, %s1323_s27  }
   0x6   :  { %s20_s29 = sshll.u32 %s1324_s28, 4  ;;  %s1325_s30 = smov 32   ;;  %s21_s29 = int_to_ptr.vmem [resolvable:$true] %s20_s29 }
   0x7   :  { %s1326_s6 = smov 2   ;;  %s45_s8 = sshll.u32 %s1882_s2, 4  ;;  %s46_s8 = int_to_ptr.hbm [resolvable:$true] %s45_s8 }
   0x8   :  { %26 = dma.hbm_to_vmem [thread:$0]  %s19_s25, 96, %s21_s29, [#allocation3], %s1325_s30, %s1325_s30, %s1326_s6  }
   0x9   :  { %s1327_s9 = smov [#allocation7]  }
   0xa   :  { %s47_s10 = sshll.u32 %s1327_s9, 4  ;;  %s48_s10 = int_to_ptr.vmem [resolvable:$true] %s47_s10 }
   0xb   :  { %50 = dma.hbm_to_vmem [thread:$0]  %s46_s8, 32, %s48_s10, [#allocation6]  }
   0xc   :  { %1315 = dma.done.wait [#allocation3], 96  }
   0xd   :  { %1316 = vsyncadd [#allocation3], 4294967200 }
   0xe   :  { %1317 = dma.done.wait [#allocation6], 9248  }
   0xf   :  { %1318 = vsyncadd [#allocation6], 4294958048  ;;  %v1888_v0 = vmov 2   ;;  %v1886_v1 = vmov 0   ;;  %v1382_v2 = vld [vmem:[#allocation5 + $0x1e0] sm:$0xff]  ;;  %v1384_v3 = vld [vmem:[#allocation5 + $0x1e8] sm:$0xff] }
  0x10   :  { %1182 = vset.pattern.permute.xlu1 %v1888_v0  ;;  %1180 = vset.pattern.permute.xlu0 %v1886_v1  ;;  %v1386_v4 = vld [vmem:[#allocation5 + $0x1f0] sm:$0xff]  ;;  %v1390_v5 = vld [vmem:[#allocation5 + $0x1f8] sm:$0xff]  ;;  %v1392_v6 = vld [vmem:[#allocation5 + $0x180] sm:$0xff]  ;;  %vm141_vm0 = vcmask 392192   ;;  %v1890_v60 = vmov 3   ;;  %vm1093_vm1 = vcmask 386048  }
  0x11   :  { %155 = vmatpush.msra.mxu0 %v1382_v2  ;;  %175 = vmatpush.msra.mxu1 %v1384_v3  ;;  %v1394_v7 = vld [vmem:[#allocation5 + $0x188] sm:$0xff]  ;;  %v1398_v8 = vld [vmem:[#allocation5 + $0x190] sm:$0xff]  ;;  %v1400_v9 = vld [vmem:[#allocation5 + $0x198] sm:$0xff]  ;;  %s1340_s0 = smov [#allocation8]   ;;  %s1108_s13 = sshll.u32 %s1884_s4, 4  ;;  %vm1098_vm2 = vcmask 1024   ;;  %s1109_s13 = int_to_ptr.hbm [resolvable:$true] %s1108_s13 }
  0x12   :  { %195 = vmatpush.msra.mxu2 %v1386_v4  ;;  %215 = vmatpush.msra.mxu3 %v1390_v5  ;;  %v1402_v10 = vld [vmem:[#allocation5 + $0x120] sm:$0xff]  ;;  %v1406_v11 = vld [vmem:[#allocation5 + $0x128] sm:$0xff]  ;;  %v1408_v12 = vld [vmem:[#allocation5 + $0x130] sm:$0xff]  ;;  %s1106_s2 = sshll.u32 %s1340_s0, 4  ;;  %s1107_s2 = int_to_ptr.vmem [resolvable:$true] %s1106_s2 }
  0x13   :  { %156 = vmatpush.msra.mxu0 %v1392_v6  ;;  %176 = vmatpush.msra.mxu1 %v1394_v7  ;;  %v1410_v13 = vld [vmem:[#allocation5 + $0x138] sm:$0xff]  ;;  %v1414_v14 = vld [vmem:[#allocation5 + $0xc0] sm:$0xff]  ;;  %v1416_v15 = vld [vmem:[#allocation5 + $0xc8] sm:$0xff] }
  0x14   :  { %196 = vmatpush.msra.mxu2 %v1398_v8  ;;  %216 = vmatpush.msra.mxu3 %v1400_v9  ;;  %v1420_v16 = vld [vmem:[#allocation5 + $0xd0] sm:$0xff]  ;;  %v1422_v17 = vld [vmem:[#allocation5 + $0xd8] sm:$0xff]  ;;  %v1426_v18 = vld [vmem:[#allocation5 + $0x60] sm:$0xff] }
  0x15   :  { %157 = vmatpush.msra.mxu0 %v1402_v10  ;;  %177 = vmatpush.msra.mxu1 %v1406_v11  ;;  %v1428_v19 = vld [vmem:[#allocation5 + $0x68] sm:$0xff]  ;;  %v1432_v20 = vld [vmem:[#allocation5 + $0x70] sm:$0xff]  ;;  %v1434_v21 = vld [vmem:[#allocation5 + $0x78] sm:$0xff] }
  0x16   :  { %197 = vmatpush.msra.mxu2 %v1408_v12  ;;  %217 = vmatpush.msra.mxu3 %v1410_v13  ;;  %v1438_v22 = vld [vmem:[#allocation5] sm:$0xff]  ;;  %v1440_v23 = vld [vmem:[#allocation5 + $0x8] sm:$0xff]  ;;  %v1444_v24 = vld [vmem:[#allocation5 + $0x10] sm:$0xff] }
  0x17   :  { %158 = vmatpush.msra.mxu0 %v1414_v14  ;;  %178 = vmatpush.msra.mxu1 %v1416_v15  ;;  %1962 = vst [vmem:[#allocation12_spill] sm:$0xff] %v1438_v22  ;;  %v1446_v25 = vld [vmem:[#allocation5 + $0x18] sm:$0xff]  ;;  %v1450_v26 = vld [vmem:[#allocation7] sm:$0x3]  ;;  %v1456_v28 = vld [vmem:[#allocation5 + $0x208] sm:$0xff] }
  0x18   :  { %198 = vmatpush.msra.mxu2 %v1420_v16  ;;  %218 = vmatpush.msra.mxu3 %v1422_v17  ;;  %1963 = vst [vmem:[#allocation13_spill] sm:$0xff] %v1440_v23  ;;  %v1454_v27 = vld [vmem:[#allocation5 + $0x200] sm:$0xff]  ;;  %v1460_v29 = vld [vmem:[#allocation5 + $0x210] sm:$0xff]  ;;  %v1462_v30 = vld [vmem:[#allocation5 + $0x218] sm:$0xff] }
  0x19   :  { %159 = vmatpush.msra.mxu0 %v1426_v18  ;;  %179 = vmatpush.msra.mxu1 %v1428_v19  ;;  %1964 = vst [vmem:[#allocation14_spill] sm:$0xff] %v1444_v24  ;;  %v1468_v31 = vld [vmem:[#allocation5 + $0x1a0] sm:$0xff]  ;;  %v1470_v32 = vld [vmem:[#allocation5 + $0x1a8] sm:$0xff]  ;;  %v1474_v33 = vld [vmem:[#allocation5 + $0x1b0] sm:$0xff] }
  0x1a   :  { %1965 = vst [vmem:[#allocation15_spill] sm:$0xff] %v1446_v25  ;;  %199 = vmatpush.msra.mxu2 %v1432_v20  ;;  %219 = vmatpush.msra.mxu3 %v1434_v21  ;;  %v1476_v34 = vld [vmem:[#allocation5 + $0x1b8] sm:$0xff]  ;;  %v1484_v36 = vld [vmem:[#allocation5 + $0x140] sm:$0xff]  ;;  %v1488_v37 = vld [vmem:[#allocation5 + $0x148] sm:$0xff] }
  0x1b   :  { %160 = vmatpush.msra.mxu0 %v1438_v22  ;;  %180 = vmatpush.msra.mxu1 %v1440_v23  ;;  %1966 = vst [vmem:[#allocation16_spill] sm:$0xff] %v1454_v27  ;;  %v1482_v35 = vld [vmem:[#allocation2] sm:$0x3]  ;;  %v1490_v38 = vld [vmem:[#allocation5 + $0x150] sm:$0xff]  ;;  %v1498_v40 = vld [vmem:[#allocation5 + $0xe0] sm:$0xff] }
  0x1c   :  { %1967 = vst [vmem:[#allocation17_spill] sm:$0xff] %v1456_v28  ;;  %200 = vmatpush.msra.mxu2 %v1444_v24  ;;  %220 = vmatpush.msra.mxu3 %v1446_v25  ;;  %v1496_v39 = vld [vmem:[#allocation5 + $0x158] sm:$0xff]  ;;  %v1502_v41 = vld [vmem:[#allocation5 + $0xe8] sm:$0xff]  ;;  %v1504_v42 = vld [vmem:[#allocation5 + $0xf0] sm:$0xff] }
  0x1d   :  { %1968 = vst [vmem:[#allocation18_spill] sm:$0xff] %v1460_v29  ;;  %1125 = vmatmul.msk.f32.vlgmr.msra.gmra.mxu2 %vm141_vm0, %v1450_v26  ;;  %1126 = vmatmul.msk.f32.vlgmr.msra.gmra.mxu3 %vm141_vm0, %v1450_v26  ;;  %v1508_v43 = vld [vmem:[#allocation5 + $0xf8] sm:$0xff]  ;;  %v1510_v44 = vld [vmem:[#allocation5 + $0x80] sm:$0xff]  ;;  %v1514_v45 = vld [vmem:[#allocation5 + $0x88] sm:$0xff] }
  0x1e   :  { %1969 = vst [vmem:[#allocation19_spill] sm:$0xff] %v1462_v30  ;;  %235 = vmatpush.msrb.mxu0 %v1454_v27  ;;  %255 = vmatpush.msrb.mxu1 %v1456_v28  ;;  %v1516_v46 = vld [vmem:[#allocation5 + $0x90] sm:$0xff]  ;;  %v1520_v47 = vld [vmem:[#allocation5 + $0x98] sm:$0xff]  ;;  %v1524_v48 = vld [vmem:[#allocation5 + $0x20] sm:$0xff] }
  0x1f   :  { %1970 = vst [vmem:[#allocation20_spill] sm:$0xff] %v1468_v31  ;;  %275 = vmatpush.msrb.mxu2 %v1460_v29  ;;  %295 = vmatpush.msrb.mxu3 %v1462_v30  ;;  %v1526_v49 = vld [vmem:[#allocation5 + $0x28] sm:$0xff]  ;;  %v1530_v50 = vld [vmem:[#allocation5 + $0x30] sm:$0xff]  ;;  %v1532_v51 = vld [vmem:[#allocation5 + $0x38] sm:$0xff] }
  0x20   :  { %1971 = vst [vmem:[#allocation21_spill] sm:$0xff] %v1470_v32  ;;  %236 = vmatpush.msrb.mxu0 %v1468_v31  ;;  %256 = vmatpush.msrb.mxu1 %v1470_v32  ;;  %v1540_v52 = vld [vmem:[#allocation5 + $0x220] sm:$0xff]  ;;  %v1542_v53 = vld [vmem:[#allocation5 + $0x228] sm:$0xff]  ;;  %v1548_v54 = vld [vmem:[#allocation5 + $0x230] sm:$0xff] }
  0x21   :  { %1972 = vst [vmem:[#allocation22_spill] sm:$0xff] %v1474_v33  ;;  %276 = vmatpush.msrb.mxu2 %v1474_v33  ;;  %296 = vmatpush.msrb.mxu3 %v1476_v34  ;;  %v1550_v55 = vld [vmem:[#allocation5 + $0x238] sm:$0xff]  ;;  %v1556_v56 = vld [vmem:[#allocation5 + $0x1c0] sm:$0xff]  ;;  %v1560_v57 = vld [vmem:[#allocation5 + $0x1c8] sm:$0xff] }
  0x22   :  { %1973 = vst [vmem:[#allocation23_spill] sm:$0xff] %v1476_v34  ;;  %1123 = vmatmul.msk.f32.vlgmr.msra.gmra.mxu0 %vm141_vm0, %v1450_v26  ;;  %1124 = vmatmul.msk.f32.vlgmr.msra.gmra.mxu1 %vm141_vm0, %v1450_v26  ;;  %v1564_v58 = vld [vmem:[#allocation5 + $0x1d0] sm:$0xff]  ;;  %v1566_v59 = vld [vmem:[#allocation5 + $0x1d8] sm:$0xff]  ;;  %v1570_v61 = vld [vmem:[#allocation5 + $0x160] sm:$0xff] }
  0x23   :  { %1974 = vst [vmem:[#allocation24_spill] sm:$0xff] %v1484_v36  ;;  %397 = vperm.xlu1 %1182, %v1482_v35   ;;  %237 = vmatpush.msrb.mxu0 %v1484_v36  ;;  %v1572_v62 = vld [vmem:[#allocation5 + $0x168] sm:$0xff]  ;;  %v1576_v63 = vld [vmem:[#allocation5 + $0x170] sm:$0xff]  ;;  %v1578_v1 = vld [vmem:[#allocation5 + $0x178] sm:$0xff] }
  0x24   :  { %1975 = vst [vmem:[#allocation25_spill] sm:$0xff] %v1488_v37  ;;  %257 = vmatpush.msrb.mxu1 %v1488_v37  ;;  %277 = vmatpush.msrb.mxu2 %v1490_v38  ;;  %v1582_v0 = vld [vmem:[#allocation5 + $0x100] sm:$0xff] }
  0x25   :  { %1976 = vst [vmem:[#allocation26_spill] sm:$0xff] %v1490_v38  ;;  %297 = vmatpush.msrb.mxu3 %v1496_v39  ;;  %238 = vmatpush.msrb.mxu0 %v1498_v40 }
  0x26   :  { %1977 = vst [vmem:[#allocation27_spill] sm:$0xff] %v1496_v39  ;;  %258 = vmatpush.msrb.mxu1 %v1502_v41  ;;  %278 = vmatpush.msrb.mxu2 %v1504_v42 }
  0x27   :  { %1978 = vst [vmem:[#allocation28_spill] sm:$0xff] %v1498_v40  ;;  %298 = vmatpush.msrb.mxu3 %v1508_v43  ;;  %239 = vmatpush.msrb.mxu0 %v1510_v44 }
  0x28   :  { %1979 = vst [vmem:[#allocation29_spill] sm:$0xff] %v1502_v41  ;;  %259 = vmatpush.msrb.mxu1 %v1514_v45  ;;  %279 = vmatpush.msrb.mxu2 %v1516_v46 }
  0x29   :  { %1980 = vst [vmem:[#allocation30_spill] sm:$0xff] %v1504_v42  ;;  %299 = vmatpush.msrb.mxu3 %v1520_v47  ;;  %387 = vperm.xlu0 %1180, %v1482_v35  }
  0x2a   :  { %1981 = vst [vmem:[#allocation31_spill] sm:$0xff] %v1508_v43  ;;  %240 = vmatpush.msrb.mxu0 %v1524_v48  ;;  %260 = vmatpush.msrb.mxu1 %v1526_v49 }
  0x2b   :  { %1982 = vst [vmem:[#allocation32_spill] sm:$0xff] %v1510_v44  ;;  %280 = vmatpush.msrb.mxu2 %v1530_v50  ;;  %300 = vmatpush.msrb.mxu3 %v1532_v51 }
  0x2c   :  { %1983 = vst [vmem:[#allocation33_spill] sm:$0xff] %v1514_v45  ;;  %1127 = vmatmul.msk.f32.vlgmr.msrb.gmra.mxu0 %vm141_vm0, %v1450_v26  ;;  %1128 = vmatmul.msk.f32.vlgmr.msrb.gmra.mxu1 %vm141_vm0, %v1450_v26 }
  0x2d   :  { %1984 = vst [vmem:[#allocation34_spill] sm:$0xff] %v1516_v46  ;;  %1129 = vmatmul.msk.f32.vlgmr.msrb.gmra.mxu2 %vm141_vm0, %v1450_v26  ;;  %1130 = vmatmul.msk.f32.vlgmr.msrb.gmra.mxu3 %vm141_vm0, %v1450_v26 }
  0x2e   :  { %1985 = vst [vmem:[#allocation35_spill] sm:$0xff] %v1520_v47  ;;  %315 = vmatpush.msra.mxu0 %v1540_v52  ;;  %335 = vmatpush.msra.mxu1 %v1542_v53 }
  0x2f   :  { %1986 = vst [vmem:[#allocation36_spill] sm:$0xff] %v1524_v48  ;;  %355 = vmatpush.msra.mxu2 %v1548_v54  ;;  %375 = vmatpush.msra.mxu3 %v1550_v55 }
  0x30   :  { %1987 = vst [vmem:[#allocation37_spill] sm:$0xff] %v1526_v49  ;;  %1183 = vset.pattern.permute.xlu1 %v1890_v60  ;;  %316 = vmatpush.msra.mxu0 %v1556_v56  ;;  %v1586_v60 = vld [vmem:[#allocation5 + $0x108] sm:$0xff] }
  0x31   :  { %1988 = vst [vmem:[#allocation38_spill] sm:$0xff] %v1530_v50  ;;  %402 = vperm.xlu1 %1183, %v1482_v35   ;;  %336 = vmatpush.msra.mxu1 %v1560_v57 }
  0x32   :  { %1989 = vst [vmem:[#allocation39_spill] sm:$0xff] %v1532_v51  ;;  %356 = vmatpush.msra.mxu2 %v1564_v58  ;;  %376 = vmatpush.msra.mxu3 %v1566_v59 }
  0x33   :  { %1990 = vst [vmem:[#allocation40_spill] sm:$0xff] %v1550_v55  ;;  %317 = vmatpush.msra.mxu0 %v1570_v61  ;;  %337 = vmatpush.msra.mxu1 %v1572_v62  ;;  %v1908_v55 = vmov 1  }
  0x34   :  { %1991 = vst [vmem:[#allocation41_spill] sm:$0xff] %v1556_v56  ;;  %v1588_v56 = vld [vmem:[#allocation5 + $0x110] sm:$0xff]  ;;  %357 = vmatpush.msra.mxu2 %v1576_v63  ;;  %377 = vmatpush.msra.mxu3 %v1578_v1 }
  0x35   :  { %1992 = vst [vmem:[#allocation42_spill] sm:$0xff] %v1560_v57  ;;  %v1592_v57 = vld [vmem:[#allocation5 + $0x118] sm:$0xff]  ;;  %1181 = vset.pattern.permute.xlu0 %v1908_v55  ;;  %318 = vmatpush.msra.mxu0 %v1582_v0  ;;  %v1612_v55 = vld [vmem:[#allocation5 + $0x48] sm:$0xff] }
  0x36   :  { %1993 = vst [vmem:[#allocation43_spill] sm:$0xff] %v1566_v59  ;;  %v1596_v59 = vld [vmem:[#allocation5 + $0xa0] sm:$0xff]  ;;  %338 = vmatpush.msra.mxu1 %v1586_v60  ;;  %358 = vmatpush.msra.mxu2 %v1588_v56 }
  0x37   :  { %1994 = vst [vmem:[#allocation44_spill] sm:$0xff] %v1570_v61  ;;  %v1598_v61 = vld [vmem:[#allocation5 + $0xa8] sm:$0xff]  ;;  %378 = vmatpush.msra.mxu3 %v1592_v57  ;;  %392 = vperm.xlu0 %1181, %v1482_v35  }
  0x38   :  { %1995 = vst [vmem:[#allocation45_spill] sm:$0xff] %v1572_v62  ;;  %v1602_v62 = vld [vmem:[#allocation5 + $0xb0] sm:$0xff]  ;;  %319 = vmatpush.msra.mxu0 %v1596_v59  ;;  %339 = vmatpush.msra.mxu1 %v1598_v61 }
  0x39   :  { %1996 = vst [vmem:[#allocation46_spill] sm:$0xff] %v1576_v63  ;;  %v1604_v63 = vld [vmem:[#allocation5 + $0xb8] sm:$0xff]  ;;  %359 = vmatpush.msra.mxu2 %v1602_v62 }
  0x3a   :  { %1997 = vst [vmem:[#allocation47_spill] sm:$0xff] %v1578_v1  ;;  %v1608_v1 = vld [vmem:[#allocation5 + $0x40] sm:$0xff]  ;;  %379 = vmatpush.msra.mxu3 %v1604_v63  ;;  %340 = vmatpush.msra.mxu1 %v1612_v55 }
  0x3b   :  { %1998 = vst [vmem:[#allocation48_spill] sm:$0xff] %v1582_v0  ;;  %v1614_v0 = vld [vmem:[#allocation5 + $0x50] sm:$0xff]  ;;  %320 = vmatpush.msra.mxu0 %v1608_v1  ;;  %1132 = vmatmul.msk.f32.vlgmr.msra.gmra.mxu1 %vm141_vm0, %v1450_v26 }
  0x3c   :  { %1999 = vst [vmem:[#allocation49_spill] sm:$0xff] %v1586_v60  ;;  %v1916_v60 = vmov 6   ;;  %360 = vmatpush.msra.mxu2 %v1614_v0  ;;  %1131 = vmatmul.msk.f32.vlgmr.msra.gmra.mxu0 %vm141_vm0, %v1450_v26 }
  0x3d   :  { %2000 = vst [vmem:[#allocation50_spill] sm:$0xff] %v1588_v56  ;;  %v1618_v56 = vld [vmem:[#allocation5 + $0x58] sm:$0xff]  ;;  %1186 = vset.pattern.permute.xlu1 %v1916_v60  ;;  %1133 = vmatmul.msk.f32.vlgmr.msra.gmra.mxu2 %vm141_vm0, %v1450_v26  ;;  %v1920_v60 = vmov 8  }
  0x3e   :  { %2001 = vst [vmem:[#allocation51_spill] sm:$0xff] %v1614_v0  ;;  %380 = vmatpush.msra.mxu3 %v1618_v56  ;;  %417 = vperm.xlu1 %1186, %v1482_v35   ;;  %v1930_v0 = vmov 4  }
  0x3f   :  { %1134 = vmatmul.msk.f32.vlgmr.msra.gmra.mxu3 %vm141_vm0, %v1450_v26  ;;  %1188 = vset.pattern.permute.xlu0 %v1920_v60  ;;  %v1922_v26 = vmov 9   ;;  %v1924_v60 = vmov 5  }
  0x40   :  { %1184 = vset.pattern.permute.xlu2 %v1930_v0  ;;  %427 = vperm.xlu0 %1188, %v1482_v35   ;;  %v2003_v0 = vmov 1  }
  0x41   :  { %407 = vperm.xlu2 %1184, %v1482_v35   ;;  %470 = vmatpush.msrb.mxu0 %v1382_v2 }
  0x42   :  { %490 = vmatpush.msrb.mxu1 %v1384_v3  ;;  %510 = vmatpush.msrb.mxu2 %v1386_v4 }
  0x43   :  { %530 = vmatpush.msrb.mxu3 %v1390_v5  ;;  %471 = vmatpush.msrb.mxu0 %v1392_v6 }
  0x44   :  { %491 = vmatpush.msrb.mxu1 %v1394_v7  ;;  %511 = vmatpush.msrb.mxu2 %v1398_v8 }
  0x45   :  { %531 = vmatpush.msrb.mxu3 %v1400_v9  ;;  %472 = vmatpush.msrb.mxu0 %v1402_v10 }
  0x46   :  { %1189 = vset.pattern.permute.xlu1 %v1922_v26  ;;  %492 = vmatpush.msrb.mxu1 %v1406_v11  ;;  %v1926_v26 = vmov 11  }
  0x47   :  { %432 = vperm.xlu1 %1189, %v1482_v35   ;;  %512 = vmatpush.msrb.mxu2 %v1408_v12 }
  0x48   :  { %532 = vmatpush.msrb.mxu3 %v1410_v13  ;;  %473 = vmatpush.msrb.mxu0 %v1414_v14 }
  0x49   :  { %1185 = vset.pattern.permute.xlu2 %v1924_v60  ;;  %493 = vmatpush.msrb.mxu1 %v1416_v15  ;;  %v1928_v60 = vmov 7  }
  0x4a   :  { %412 = vperm.xlu2 %1185, %v1482_v35   ;;  %513 = vmatpush.msrb.mxu2 %v1420_v16 }
  0x4b   :  { %533 = vmatpush.msrb.mxu3 %v1422_v17  ;;  %474 = vmatpush.msrb.mxu0 %v1426_v18 }
  0x4c   :  { %494 = vmatpush.msrb.mxu1 %v1428_v19  ;;  %514 = vmatpush.msrb.mxu2 %v1432_v20 }
  0x4d   :  { %534 = vmatpush.msrb.mxu3 %v1434_v21  ;;  %475 = vmatpush.msrb.mxu0 %v1438_v22 }
  0x4e   :  { %495 = vmatpush.msrb.mxu1 %v1440_v23  ;;  %515 = vmatpush.msrb.mxu2 %v1444_v24  ;;  %v2010_v23 = vmov 5  }
  0x4f   :  { %1191 = vset.pattern.permute.xlu1 %v1926_v26  ;;  %535 = vmatpush.msrb.mxu3 %v1446_v25  ;;  %v2002_v26 = vmov 2  }
  0x50   :  { %442 = vperm.xlu1 %1191, %v1482_v35   ;;  %550 = vmatpush.msra.mxu0 %v1454_v27 }
  0x51   :  { %570 = vmatpush.msra.mxu1 %v1456_v28  ;;  %590 = vmatpush.msra.mxu2 %v1460_v29 }
  0x52   :  { %1187 = vset.pattern.permute.xlu2 %v1928_v60  ;;  %610 = vmatpush.msra.mxu3 %v1462_v30  ;;  %v1932_v60 = vmov 10  }
  0x53   :  { %422 = vperm.xlu2 %1187, %v1482_v35   ;;  %551 = vmatpush.msra.mxu0 %v1468_v31 }
  0x54   :  { %571 = vmatpush.msra.mxu1 %v1470_v32  ;;  %591 = vmatpush.msra.mxu2 %v1474_v33 }
  0x55   :  { %611 = vmatpush.msra.mxu3 %v1476_v34  ;;  %552 = vmatpush.msra.mxu0 %v1484_v36 }
  0x56   :  { %572 = vmatpush.msra.mxu1 %v1488_v37  ;;  %592 = vmatpush.msra.mxu2 %v1490_v38 }
  0x57   :  { %612 = vmatpush.msra.mxu3 %v1496_v39  ;;  %553 = vmatpush.msra.mxu0 %v1498_v40 }
  0x58   :  { %1194 = vset.pattern.permute.xlu1 %v2002_v26  ;;  %573 = vmatpush.msra.mxu1 %v1502_v41  ;;  %v2004_v26 = vmov 0   ;;  %v2007_v41 = vmov 3  }
  0x59   :  { %593 = vmatpush.msra.mxu2 %v1504_v42  ;;  %613 = vmatpush.msra.mxu3 %v1508_v43  ;;  %v2005_v43 = vmov 4   ;;  %v2006_v42 = vmov 6  }
  0x5a   :  { %554 = vmatpush.msra.mxu0 %v1510_v44  ;;  %574 = vmatpush.msra.mxu1 %v1514_v45 }
  0x5b   :  { %1190 = vset.pattern.permute.xlu2 %v1932_v60  ;;  %594 = vmatpush.msra.mxu2 %v1516_v46 }
  0x5c   :  { %437 = vperm.xlu2 %1190, %v1482_v35   ;;  %614 = vmatpush.msra.mxu3 %v1520_v47  ;;  %v1699_v35 = vld [vmem:[#allocation2 + $0x2] sm:$0x3] }
  0x5d   :  { %555 = vmatpush.msra.mxu0 %v1524_v48  ;;  %575 = vmatpush.msra.mxu1 %v1526_v49 }
  0x5e   :  { %595 = vmatpush.msra.mxu2 %v1530_v50  ;;  %615 = vmatpush.msra.mxu3 %v1532_v51 }
  0x5f   :  { %1193 = vset.pattern.permute.xlu0 %v2003_v0  ;;  %712 = vperm.xlu1 %1194, %v1699_v35  }
  0x60   :  { %707 = vperm.xlu0 %1193, %v1699_v35  }
  0x64   :  { %1192 = vset.pattern.permute.xlu2 %v2004_v26  ;;  %v2008_v26 = vmov 7  }
  0x65   :  { %702 = vperm.xlu2 %1192, %v1699_v35  }
  0x67   :  { %1196 = vset.pattern.permute.xlu1 %v2005_v43 }
  0x68   :  { %1198 = vset.pattern.permute.xlu0 %v2006_v42  ;;  %722 = vperm.xlu1 %1196, %v1699_v35   ;;  %v2009_v42 = vmov 11  }
  0x69   :  { %732 = vperm.xlu0 %1198, %v1699_v35  }
  0x6d   :  { %1195 = vset.pattern.permute.xlu2 %v2007_v41 }
  0x6e   :  { %717 = vperm.xlu2 %1195, %v1699_v35  }
  0x70   :  { %1199 = vset.pattern.permute.xlu1 %v2008_v26 }
  0x71   :  { %1203 = vset.pattern.permute.xlu0 %v2009_v42  ;;  %737 = vperm.xlu1 %1199, %v1699_v35  }
  0x72   :  { %757 = vperm.xlu0 %1203, %v1699_v35  }
  0x76   :  { %1197 = vset.pattern.permute.xlu2 %v2010_v23 }
  0x77   :  { %727 = vperm.xlu2 %1197, %v1699_v35  }
  0x7a   :  { %1208 = vset.pattern.permute.xlu0 %v2005_v43  ;;  %v2021_v43 = vld [vmem:[#allocation48_spill] sm:$0xff] }
  0x95   :  { %v398_v60 = vpop.permute.xlu1 %397 }
  0x9b   :  { %v408_v45 = vpop.permute.xlu2 %407  ;;  %v388_v48 = vpop.permute.xlu0 %387 }
  0x9f   :  { %v162_v49 = vpop.f32.mrf.mxu0  ;;  %v182_v50 = vpop.f32.mrf.mxu1 }
  0xa0   :  { %v202_v51 = vpop.f32.mrf.mxu2  ;;  %v222_v0 = vpop.f32.mrf.mxu3  ;;  %v390_v41 = vmul.f32 %v388_v48, %v162_v49 }
  0xa1   :  { %v400_v30 = vmul.f32 %v398_v60, %v202_v51 }
  0xa3   :  { %v403_v44 = vpop.permute.xlu1 %402 }
  0xa4   :  { %v413_v47 = vpop.permute.xlu2 %412  ;;  %v405_v29 = vmul.f32 %v403_v44, %v222_v0 }
  0xa9   :  { %v393_v40 = vpop.permute.xlu0 %392  ;;  %v242_v39 = vpop.f32.mrf.mxu0 }
  0xaa   :  { %v262_v38 = vpop.f32.mrf.mxu1  ;;  %v395_v28 = vmul.f32 %v393_v40, %v182_v50  ;;  %v410_v27 = vmul.f32 %v408_v45, %v242_v39  ;;  %v2011_v45 = vmov 9  }
  0xab   :  { %v415_v25 = vmul.f32 %v413_v47, %v262_v38  ;;  %1201 = vset.pattern.permute.xlu1 %v2011_v45 }
  0xac   :  { %v446_v51 = vadd.f32 %v395_v28, %v390_v41  ;;  %747 = vperm.xlu1 %1201, %v1699_v35   ;;  %v2014_v28 = vld [vmem:[#allocation41_spill] sm:$0xff]  ;;  %v2019_v41 = vld [vmem:[#allocation46_spill] sm:$0xff] }
  0xad   :  { %v423_v36 = vpop.permute.xlu2 %422  ;;  %v448_v0 = vadd.f32 %v415_v25, %v410_v27 }
  0xb0   :  { %v418_v46 = vpop.permute.xlu1 %417  ;;  %v282_v37 = vpop.f32.mrf.mxu2 }
  0xb1   :  { %v302_v34 = vpop.f32.mrf.mxu3  ;;  %v420_v32 = vmul.f32 %v418_v46, %v282_v37 }
  0xb2   :  { %v425_v31 = vmul.f32 %v423_v36, %v302_v34  ;;  %v428_v24 = vpop.permute.xlu0 %427  ;;  %v447_v36 = vadd.f32 %v405_v29, %v400_v30  ;;  %v2012_v29 = vmov 8   ;;  %v2015_v30 = vld [vmem:[#allocation42_spill] sm:$0xff] }
  0xb3   :  { %1200 = vset.pattern.permute.xlu2 %v2012_v29 }
  0xb4   :  { %v449_v34 = vadd.f32 %v425_v31, %v420_v32  ;;  %v452_v47 = vadd.f32 %v447_v36, %v446_v51  ;;  %742 = vperm.xlu2 %1200, %v1699_v35   ;;  %v2016_v31 = vld [vmem:[#allocation43_spill] sm:$0xff]  ;;  %v2017_v32 = vld [vmem:[#allocation44_spill] sm:$0xff]  ;;  %v2025_v36 = vmov 10   ;;  %v2048_v51 = vld [vmem:[#allocation33_spill] sm:$0xff] }
  0xb6   :  { %v438_v46 = vpop.permute.xlu2 %437  ;;  %v453_v40 = vadd.f32 %v449_v34, %v448_v0  ;;  %v2024_v34 = vld [vmem:[#allocation51_spill] sm:$0xff]  ;;  %v2049_v0 = vld [vmem:[#allocation34_spill] sm:$0xff] }
  0xb8   :  { %v342_v37 = vpop.f32.mrf.mxu1  ;;  %v455_v25 = vadd.f32 %v453_v40, %v452_v47  ;;  %v2053_v40 = vld [vmem:[#allocation38_spill] sm:$0xff] }
  0xb9   :  { %v433_v33 = vpop.permute.xlu1 %432  ;;  %v322_v22 = vpop.f32.mrf.mxu0 }
  0xba   :  { %v435_v44 = vmul.f32 %v433_v33, %v342_v37  ;;  %v430_v60 = vmul.f32 %v428_v24, %v322_v22  ;;  %v2013_v24 = vld [vmem:[#allocation40_spill] sm:$0xff]  ;;  %v2018_v33 = vld [vmem:[#allocation45_spill] sm:$0xff]  ;;  %v2023_v37 = vld [vmem:[#allocation50_spill] sm:$0xff] }
  0xbc   :  { %v450_v49 = vadd.f32 %v435_v44, %v430_v60  ;;  %1202 = vset.pattern.permute.xlu2 %v2025_v36  ;;  %v2050_v44 = vld [vmem:[#allocation35_spill] sm:$0xff]  ;;  %v2051_v60 = vld [vmem:[#allocation36_spill] sm:$0xff] }
  0xbd   :  { %752 = vperm.xlu2 %1202, %v1699_v35   ;;  %v2046_v35 = vld [vmem:[#allocation31_spill] sm:$0xff] }
  0xbf   :  { %v703_v47 = vpop.permute.xlu2 %702 }
  0xc0   :  { %v362_v42 = vpop.f32.mrf.mxu2 }
  0xc1   :  { %v440_v39 = vmul.f32 %v438_v46, %v362_v42  ;;  %v2020_v42 = vld [vmem:[#allocation47_spill] sm:$0xff]  ;;  %v2047_v46 = vld [vmem:[#allocation32_spill] sm:$0xff] }
  0xc2   :  { %v443_v26 = vpop.permute.xlu1 %442  ;;  %v382_v48 = vpop.f32.mrf.mxu3 }
  0xc3   :  { %v445_v38 = vmul.f32 %v443_v26, %v382_v48  ;;  %v2022_v26 = vld [vmem:[#allocation49_spill] sm:$0xff] }
  0xc4   :  { %v2052_v48 = vld [vmem:[#allocation37_spill] sm:$0xff] }
  0xc5   :  { %v451_v50 = vadd.f32 %v445_v38, %v440_v39  ;;  %v2054_v39 = vld [vmem:[#allocation39_spill] sm:$0xff]  ;;  %v2055_v38 = vmov 1  }
  0xc6   :  { %1205 = vset.pattern.permute.xlu2 %v2055_v38 }
  0xc7   :  { %v454_v27 = vadd.f32 %v451_v50, %v450_v49 }
  0xc8   :  { %v718_v50 = vpop.permute.xlu2 %717 }
  0xc9   :  { %v456_v22 = vadd.f32 %v455_v25, %v454_v27  ;;  %v1809_v25 = vld [vmem:[#allocation2 + $0x4] sm:$0x3] }
  0xca   :  { %1037 = vperm.xlu0 %1208, %v1809_v25   ;;  %1022 = vperm.xlu2 %1205, %v1809_v25  }
  0xcb   :  { %1135 = vmatmul.msk.f32.vlgmr.msrb.gmra.mxu0 %vm141_vm0, %v456_v22  ;;  %1136 = vmatmul.msk.f32.vlgmr.msrb.gmra.mxu1 %vm141_vm0, %v456_v22 }
  0xcc   :  { %1137 = vmatmul.msk.f32.vlgmr.msrb.gmra.mxu2 %vm141_vm0, %v456_v22  ;;  %1138 = vmatmul.msk.f32.vlgmr.msrb.gmra.mxu3 %vm141_vm0, %v456_v22 }
  0xcd   :  { %630 = vmatpush.msrb.mxu0 %v1540_v52  ;;  %650 = vmatpush.msrb.mxu1 %v1542_v53 }
  0xce   :  { %670 = vmatpush.msrb.mxu2 %v1548_v54  ;;  %690 = vmatpush.msrb.mxu3 %v2013_v24 }
  0xcf   :  { %631 = vmatpush.msrb.mxu0 %v2014_v28  ;;  %651 = vmatpush.msrb.mxu1 %v2015_v30 }
  0xd0   :  { %671 = vmatpush.msrb.mxu2 %v1564_v58  ;;  %691 = vmatpush.msrb.mxu3 %v2016_v31 }
  0xd1   :  { %632 = vmatpush.msrb.mxu0 %v2017_v32  ;;  %652 = vmatpush.msrb.mxu1 %v2018_v33  ;;  %v713_v49 = vpop.permute.xlu1 %712 }
  0xd2   :  { %672 = vmatpush.msrb.mxu2 %v2019_v41  ;;  %692 = vmatpush.msrb.mxu3 %v2020_v42 }
  0xd3   :  { %1139 = vmatmul.msk.f32.vlgmr.msra.gmra.mxu0 %vm141_vm0, %v456_v22  ;;  %1140 = vmatmul.msk.f32.vlgmr.msra.gmra.mxu1 %vm141_vm0, %v456_v22 }
  0xd4   :  { %1141 = vmatmul.msk.f32.vlgmr.msra.gmra.mxu2 %vm141_vm0, %v456_v22  ;;  %1142 = vmatmul.msk.f32.vlgmr.msra.gmra.mxu3 %vm141_vm0, %v456_v22 }
  0xd5   :  { %633 = vmatpush.msrb.mxu0 %v2021_v43  ;;  %653 = vmatpush.msrb.mxu1 %v2022_v26 }
  0xd6   :  { %673 = vmatpush.msrb.mxu2 %v2023_v37  ;;  %693 = vmatpush.msrb.mxu3 %v1592_v57 }
  0xd7   :  { %634 = vmatpush.msrb.mxu0 %v1596_v59  ;;  %654 = vmatpush.msrb.mxu1 %v1598_v61 }
  0xd8   :  { %674 = vmatpush.msrb.mxu2 %v1602_v62  ;;  %694 = vmatpush.msrb.mxu3 %v1604_v63 }
  0xd9   :  { %635 = vmatpush.msrb.mxu0 %v1608_v1  ;;  %655 = vmatpush.msrb.mxu1 %v1612_v55 }
  0xda   :  { %675 = vmatpush.msrb.mxu2 %v2024_v34  ;;  %695 = vmatpush.msrb.mxu3 %v1618_v56  ;;  %v723_v27 = vpop.permute.xlu1 %722 }
  0xdb   :  { %1143 = vmatmul.msk.f32.vlgmr.msrb.gmra.mxu0 %vm141_vm0, %v456_v22  ;;  %1144 = vmatmul.msk.f32.vlgmr.msrb.gmra.mxu1 %vm141_vm0, %v456_v22 }
  0xdc   :  { %1145 = vmatmul.msk.f32.vlgmr.msrb.gmra.mxu2 %vm141_vm0, %v456_v22  ;;  %1146 = vmatmul.msk.f32.vlgmr.msrb.gmra.mxu3 %vm141_vm0, %v456_v22 }
  0xdd   :  { %785 = vmatpush.msra.mxu0 %v1382_v2  ;;  %805 = vmatpush.msra.mxu1 %v1384_v3  ;;  %v2026_v2 = vld [vmem:[#allocation12_spill] sm:$0xff]  ;;  %v2027_v3 = vld [vmem:[#allocation13_spill] sm:$0xff] }
  0xde   :  { %825 = vmatpush.msra.mxu2 %v1386_v4  ;;  %845 = vmatpush.msra.mxu3 %v1390_v5  ;;  %v2028_v4 = vld [vmem:[#allocation14_spill] sm:$0xff]  ;;  %v2029_v5 = vld [vmem:[#allocation15_spill] sm:$0xff] }
  0xdf   :  { %786 = vmatpush.msra.mxu0 %v1392_v6  ;;  %806 = vmatpush.msra.mxu1 %v1394_v7  ;;  %v2030_v6 = vld [vmem:[#allocation16_spill] sm:$0xff]  ;;  %v2031_v7 = vld [vmem:[#allocation17_spill] sm:$0xff] }
  0xe0   :  { %826 = vmatpush.msra.mxu2 %v1398_v8  ;;  %846 = vmatpush.msra.mxu3 %v1400_v9  ;;  %v2032_v8 = vld [vmem:[#allocation18_spill] sm:$0xff]  ;;  %v2033_v9 = vld [vmem:[#allocation19_spill] sm:$0xff] }
  0xe1   :  { %787 = vmatpush.msra.mxu0 %v1402_v10  ;;  %807 = vmatpush.msra.mxu1 %v1406_v11  ;;  %v2034_v10 = vmov 0   ;;  %v2035_v11 = vld [vmem:[#allocation20_spill] sm:$0xff] }
  0xe2   :  { %827 = vmatpush.msra.mxu2 %v1408_v12  ;;  %847 = vmatpush.msra.mxu3 %v1410_v13  ;;  %v2036_v12 = vld [vmem:[#allocation21_spill] sm:$0xff]  ;;  %v2037_v13 = vld [vmem:[#allocation22_spill] sm:$0xff] }
  0xe3   :  { %788 = vmatpush.msra.mxu0 %v1414_v14  ;;  %808 = vmatpush.msra.mxu1 %v1416_v15  ;;  %v2038_v14 = vld [vmem:[#allocation23_spill] sm:$0xff]  ;;  %v2039_v15 = vld [vmem:[#allocation24_spill] sm:$0xff] }
  0xe4   :  { %828 = vmatpush.msra.mxu2 %v1420_v16  ;;  %848 = vmatpush.msra.mxu3 %v1422_v17  ;;  %v2040_v16 = vld [vmem:[#allocation25_spill] sm:$0xff]  ;;  %v2041_v17 = vld [vmem:[#allocation26_spill] sm:$0xff] }
  0xe5   :  { %789 = vmatpush.msra.mxu0 %v1426_v18  ;;  %809 = vmatpush.msra.mxu1 %v1428_v19  ;;  %v2042_v18 = vld [vmem:[#allocation27_spill] sm:$0xff]  ;;  %v2043_v19 = vld [vmem:[#allocation28_spill] sm:$0xff] }
  0xe6   :  { %829 = vmatpush.msra.mxu2 %v1432_v20  ;;  %849 = vmatpush.msra.mxu3 %v1434_v21  ;;  %v2044_v20 = vld [vmem:[#allocation29_spill] sm:$0xff]  ;;  %v2045_v21 = vld [vmem:[#allocation30_spill] sm:$0xff] }
  0xe7   :  { %790 = vmatpush.msra.mxu0 %v2026_v2  ;;  %810 = vmatpush.msra.mxu1 %v2027_v3  ;;  %v728_v3 = vpop.permute.xlu2 %727 }
  0xe8   :  { %830 = vmatpush.msra.mxu2 %v2028_v4  ;;  %850 = vmatpush.msra.mxu3 %v2029_v5  ;;  %v708_v4 = vpop.permute.xlu0 %707  ;;  %v2056_v5 = vmov 2  }
  0xe9   :  { %865 = vmatpush.msrb.mxu0 %v2030_v6  ;;  %885 = vmatpush.msrb.mxu1 %v2031_v7 }
  0xea   :  { %905 = vmatpush.msrb.mxu2 %v2032_v8  ;;  %925 = vmatpush.msrb.mxu3 %v2033_v9  ;;  %v2057_v8 = vmov 3   ;;  %v738_v9 = vpop.permute.xlu1 %737 }
  0xeb   :  { %1204 = vset.pattern.permute.xlu1 %v2034_v10  ;;  %866 = vmatpush.msrb.mxu0 %v2035_v11 }
  0xec   :  { %886 = vmatpush.msrb.mxu1 %v2036_v12  ;;  %906 = vmatpush.msrb.mxu2 %v2037_v13 }
  0xed   :  { %926 = vmatpush.msrb.mxu3 %v2038_v14  ;;  %867 = vmatpush.msrb.mxu0 %v2039_v15  ;;  %v2058_v14 = vmov 11  }
  0xee   :  { %887 = vmatpush.msrb.mxu1 %v2040_v16  ;;  %907 = vmatpush.msrb.mxu2 %v2041_v17 }
  0xef   :  { %927 = vmatpush.msrb.mxu3 %v2042_v18  ;;  %868 = vmatpush.msrb.mxu0 %v2043_v19  ;;  %v2059_v18 = vmov 6  }
  0xf0   :  { %888 = vmatpush.msrb.mxu1 %v2044_v20  ;;  %908 = vmatpush.msrb.mxu2 %v2045_v21  ;;  %v733_v13 = vpop.permute.xlu0 %732 }
  0xf1   :  { %928 = vmatpush.msrb.mxu3 %v2046_v35  ;;  %869 = vmatpush.msrb.mxu0 %v2047_v46 }
  0xf2   :  { %889 = vmatpush.msrb.mxu1 %v2048_v51  ;;  %909 = vmatpush.msrb.mxu2 %v2049_v0 }
  0xf3   :  { %929 = vmatpush.msrb.mxu3 %v2050_v44  ;;  %870 = vmatpush.msrb.mxu0 %v2051_v60 }
  0xf4   :  { %890 = vmatpush.msrb.mxu1 %v2052_v48  ;;  %910 = vmatpush.msrb.mxu2 %v2053_v40 }
  0xf5   :  { %930 = vmatpush.msrb.mxu3 %v2054_v39  ;;  %1017 = vperm.xlu1 %1204, %v1809_v25  }
  0xf6   :  { %1213 = vset.pattern.permute.xlu0 %v2011_v45  ;;  %1207 = vset.pattern.permute.xlu2 %v2057_v8 }
  0xf7   :  { %1062 = vperm.xlu0 %1213, %v1809_v25   ;;  %1032 = vperm.xlu2 %1207, %v1809_v25  }
  0xf8   :  { %v758_v40 = vpop.permute.xlu0 %757 }
  0xfd   :  { %1206 = vset.pattern.permute.xlu1 %v2056_v5 }
  0xfe   :  { %1027 = vperm.xlu1 %1206, %v1809_v25  }
  0xff   :  { %1216 = vset.pattern.permute.xlu0 %v2058_v14  ;;  %1210 = vset.pattern.permute.xlu2 %v2059_v18 }
 0x100   :  { %1047 = vperm.xlu2 %1210, %v1809_v25  }
 0x106   :  { %1209 = vset.pattern.permute.xlu1 %v2010_v23 }
 0x107   :  { %1042 = vperm.xlu1 %1209, %v1809_v25  }
 0x108   :  { %1212 = vset.pattern.permute.xlu2 %v2012_v29 }
 0x109   :  { %1057 = vperm.xlu2 %1212, %v1809_v25  }
 0x10e   :  { %v743_v12 = vpop.permute.xlu2 %742 }
 0x111   :  { %1215 = vset.pattern.permute.xlu2 %v2058_v14 }
 0x112   :  { %1072 = vperm.xlu2 %1215, %v1809_v25  }
 0x117   :  { %v753_v48 = vpop.permute.xlu2 %752 }
 0x11e   :  { %v748_v46 = vpop.permute.xlu1 %747 }
 0x148   :  { %v477_v22 = vpop.f32.mrf.mxu0  ;;  %v497_v2 = vpop.f32.mrf.mxu1 }
 0x149   :  { %v705_v23 = vmul.f32 %v703_v47, %v477_v22  ;;  %v710_v44 = vmul.f32 %v708_v4, %v497_v2 }
 0x14f   :  { %v517_v6 = vpop.f32.mrf.mxu2  ;;  %v537_v7 = vpop.f32.mrf.mxu3 }
 0x150   :  { %v557_v10 = vpop.f32.mrf.mxu0  ;;  %v577_v11 = vpop.f32.mrf.mxu1  ;;  %v715_v19 = vmul.f32 %v713_v49, %v517_v6  ;;  %v720_v20 = vmul.f32 %v718_v50, %v537_v7  ;;  %v761_v49 = vadd.f32 %v710_v44, %v705_v23 }
 0x151   :  { %v725_v21 = vmul.f32 %v723_v27, %v557_v10  ;;  %v730_v35 = vmul.f32 %v728_v3, %v577_v11 }
 0x152   :  { %v762_v39 = vadd.f32 %v720_v20, %v715_v19 }
 0x153   :  { %v763_v38 = vadd.f32 %v730_v35, %v725_v21 }
 0x154   :  { %v767_v47 = vadd.f32 %v762_v39, %v761_v49 }
 0x157   :  { %v597_v45 = vpop.f32.mrf.mxu2  ;;  %v617_v15 = vpop.f32.mrf.mxu3 }
 0x158   :  { %v735_v16 = vmul.f32 %v733_v13, %v597_v45  ;;  %v740_v17 = vmul.f32 %v738_v9, %v617_v15  ;;  %v637_v51 = vpop.f32.mrf.mxu0  ;;  %v657_v0 = vpop.f32.mrf.mxu1  ;;  %v2060_v45 = vmov 7  }
 0x159   :  { %v745_v5 = vmul.f32 %v743_v12, %v637_v51  ;;  %v750_v8 = vmul.f32 %v748_v46, %v657_v0  ;;  %1211 = vset.pattern.permute.xlu1 %v2060_v45 }
 0x15a   :  { %v764_v60 = vadd.f32 %v740_v17, %v735_v16  ;;  %1052 = vperm.xlu1 %1211, %v1809_v25  }
 0x15b   :  { %v765_v22 = vadd.f32 %v750_v8, %v745_v5  ;;  %v1091_v8 = vld [vmem:[%s1883_s3] sm:$0x3] }
 0x15c   :  { %v768_v50 = vadd.f32 %v764_v60, %v763_v38 }
 0x15e   :  { %v770_v4 = vadd.f32 %v768_v50, %v767_v47 }
 0x15f   :  { %v677_v9 = vpop.f32.mrf.mxu2  ;;  %v697_v13 = vpop.f32.mrf.mxu3 }
 0x160   :  { %v755_v27 = vmul.f32 %v753_v48, %v677_v9  ;;  %v760_v3 = vmul.f32 %v758_v40, %v697_v13 }
 0x162   :  { %v766_v2 = vadd.f32 %v760_v3, %v755_v27  ;;  %1214 = vset.pattern.permute.xlu1 %v2025_v36 }
 0x163   :  { %1067 = vperm.xlu1 %1214, %v1809_v25  }
 0x164   :  { %v769_v6 = vadd.f32 %v766_v2, %v765_v22 }
 0x166   :  { %v771_v7 = vadd.f32 %v770_v4, %v769_v6 }
 0x168   :  { %1147 = vmatmul.msk.f32.vlgmr.msra.gmra.mxu0 %vm141_vm0, %v771_v7  ;;  %1148 = vmatmul.msk.f32.vlgmr.msra.gmra.mxu1 %vm141_vm0, %v771_v7 }
 0x169   :  { %1149 = vmatmul.msk.f32.vlgmr.msra.gmra.mxu2 %vm141_vm0, %v771_v7  ;;  %1150 = vmatmul.msk.f32.vlgmr.msra.gmra.mxu3 %vm141_vm0, %v771_v7 }
 0x16a   :  { %945 = vmatpush.msra.mxu0 %v1540_v52  ;;  %965 = vmatpush.msra.mxu1 %v1542_v53  ;;  %v1018_v52 = vpop.permute.xlu1 %1017 }
 0x16b   :  { %985 = vmatpush.msra.mxu2 %v1548_v54  ;;  %1005 = vmatpush.msra.mxu3 %v2013_v24 }
 0x16c   :  { %946 = vmatpush.msra.mxu0 %v2014_v28  ;;  %966 = vmatpush.msra.mxu1 %v2015_v30 }
 0x16d   :  { %986 = vmatpush.msra.mxu2 %v1564_v58  ;;  %1006 = vmatpush.msra.mxu3 %v2016_v31 }
 0x16e   :  { %947 = vmatpush.msra.mxu0 %v2017_v32  ;;  %967 = vmatpush.msra.mxu1 %v2018_v33 }
 0x16f   :  { %987 = vmatpush.msra.mxu2 %v2019_v41  ;;  %1007 = vmatpush.msra.mxu3 %v2020_v42 }
 0x170   :  { %1151 = vmatmul.msk.f32.vlgmr.msrb.gmra.mxu0 %vm141_vm0, %v771_v7  ;;  %1152 = vmatmul.msk.f32.vlgmr.msrb.gmra.mxu1 %vm141_vm0, %v771_v7 }
 0x171   :  { %1153 = vmatmul.msk.f32.vlgmr.msrb.gmra.mxu2 %vm141_vm0, %v771_v7  ;;  %1154 = vmatmul.msk.f32.vlgmr.msrb.gmra.mxu3 %vm141_vm0, %v771_v7 }
 0x172   :  { %948 = vmatpush.msra.mxu0 %v2021_v43  ;;  %968 = vmatpush.msra.mxu1 %v2022_v26  ;;  %v1028_v54 = vpop.permute.xlu1 %1027 }
 0x173   :  { %988 = vmatpush.msra.mxu2 %v2023_v37  ;;  %1008 = vmatpush.msra.mxu3 %v1592_v57 }
 0x174   :  { %949 = vmatpush.msra.mxu0 %v1596_v59  ;;  %969 = vmatpush.msra.mxu1 %v1598_v61 }
 0x175   :  { %989 = vmatpush.msra.mxu2 %v1602_v62  ;;  %1009 = vmatpush.msra.mxu3 %v1604_v63  ;;  %v1038_v62 = vpop.permute.xlu0 %1037 }
 0x176   :  { %950 = vmatpush.msra.mxu0 %v1608_v1  ;;  %970 = vmatpush.msra.mxu1 %v1612_v55  ;;  %v1023_v1 = vpop.permute.xlu2 %1022 }
 0x177   :  { %990 = vmatpush.msra.mxu2 %v2024_v34  ;;  %1010 = vmatpush.msra.mxu3 %v1618_v56 }
 0x178   :  { %1155 = vmatmul.msk.f32.vlgmr.msra.gmra.mxu0 %vm141_vm0, %v771_v7  ;;  %1156 = vmatmul.msk.f32.vlgmr.msra.gmra.mxu1 %vm141_vm0, %v771_v7 }
 0x179   :  { %1157 = vmatmul.msk.f32.vlgmr.msra.gmra.mxu2 %vm141_vm0, %v771_v7  ;;  %1158 = vmatmul.msk.f32.vlgmr.msra.gmra.mxu3 %vm141_vm0, %v771_v7 }
 0x17a   :  { %v1043_v58 = vpop.permute.xlu1 %1042 }
 0x17d   :  { %v1063_v37 = vpop.permute.xlu0 %1062 }
 0x17e   :  { %v1033_v53 = vpop.permute.xlu2 %1032 }
 0x186   :  { %v1048_v57 = vpop.permute.xlu2 %1047 }
 0x18e   :  { %v1058_v24 = vpop.permute.xlu2 %1057 }
 0x196   :  { %v1073_v12 = vpop.permute.xlu2 %1072 }
 0x1cc   :  { %v1053_v28 = vpop.permute.xlu1 %1052 }
 0x1d5   :  { %v1068_v14 = vpop.permute.xlu1 %1067 }
 0x1e5   :  { %v792_v55 = vpop.f32.mrf.mxu0  ;;  %v812_v56 = vpop.f32.mrf.mxu1 }
 0x1e6   :  { %v1020_v25 = vmul.f32 %v1018_v52, %v792_v55  ;;  %v1025_v10 = vmul.f32 %v1023_v1, %v812_v56 }
 0x1e8   :  { %v1076_v21 = vadd.f32 %v1025_v10, %v1020_v25 }
 0x1ec   :  { %v832_v59 = vpop.f32.mrf.mxu2  ;;  %v852_v61 = vpop.f32.mrf.mxu3 }
 0x1ed   :  { %v872_v63 = vpop.f32.mrf.mxu0  ;;  %v892_v29 = vpop.f32.mrf.mxu1  ;;  %v1030_v41 = vmul.f32 %v1028_v54, %v832_v59  ;;  %v1035_v42 = vmul.f32 %v1033_v53, %v852_v61 }
 0x1ee   :  { %v1045_v43 = vmul.f32 %v1043_v58, %v892_v29  ;;  %v1040_v26 = vmul.f32 %v1038_v62, %v872_v63 }
 0x1ef   :  { %v1077_v15 = vadd.f32 %v1035_v42, %v1030_v41 }
 0x1f0   :  { %v1078_v16 = vadd.f32 %v1045_v43, %v1040_v26 }
 0x1f1   :  { %v1082_v0 = vadd.f32 %v1077_v15, %v1076_v21 }
 0x1f4   :  { %v912_v30 = vpop.f32.mrf.mxu2  ;;  %v932_v31 = vpop.f32.mrf.mxu3 }
 0x1f5   :  { %v1050_v32 = vmul.f32 %v1048_v57, %v912_v30  ;;  %v1055_v33 = vmul.f32 %v1053_v28, %v932_v31  ;;  %v952_v34 = vpop.f32.mrf.mxu0  ;;  %v972_v36 = vpop.f32.mrf.mxu1 }
 0x1f6   :  { %v1060_v17 = vmul.f32 %v1058_v24, %v952_v34  ;;  %v1065_v18 = vmul.f32 %v1063_v37, %v972_v36 }
 0x1f7   :  { %v1079_v11 = vadd.f32 %v1055_v33, %v1050_v32 }
 0x1f8   :  { %v1080_v23 = vadd.f32 %v1065_v18, %v1060_v17 }
 0x1f9   :  { %v1083_v35 = vadd.f32 %v1079_v11, %v1078_v16 }
 0x1fb   :  { %v1085_v60 = vadd.f32 %v1083_v35, %v1082_v0 }
 0x1fc   :  { %v992_v19 = vpop.f32.mrf.mxu2  ;;  %v1012_v20 = vpop.f32.mrf.mxu3 }
 0x1fd   :  { %v1070_v46 = vmul.f32 %v1068_v14, %v992_v19  ;;  %v1075_v51 = vmul.f32 %v1073_v12, %v1012_v20 }
 0x1ff   :  { %v1081_v44 = vadd.f32 %v1075_v51, %v1070_v46 }
 0x201   :  { %v1084_v48 = vadd.f32 %v1081_v44, %v1080_v23 }
 0x203   :  { %v1086_v40 = vadd.f32 %v1085_v60, %v1084_v48 }
 0x205   :  { %v1087_v39 = vadd.f32 0.0001, %v1086_v40  ;;  %1100 = vst.msk [vmem:[#allocation8] sm:$0x3] %vm1093_vm1, %v1086_v40 }
 0x206   :  { %1111 = dma.vmem_to_hbm [thread:$0]  %s1107_s2, 32, %s1109_s13, [#allocation4]  }
 0x207   :  { %1217 = vlog2.f32 %v1087_v39 }
 0x20d   :  { %v1218_v38 = vpop.eup %1217 }
 0x20e   :  { %v1089_v5 = vmul.f32 0.6931472, %v1218_v38 }
 0x210   :  { %v1159_v9 = vadd.f32 -9.9995e-05, %v1089_v5 }
 0x212   :  { %v1092_v13 = vmul.f32 %v1159_v9, %v1091_v8 }
 0x214   :  { %v1094_v45 = vsel %vm1093_vm1, %v1092_v13, 0.0 }
 0x215   :  { %1095 = vadd.xlane.f32.xlu1 %v1094_v45 }
 0x288   :  { %v1096_v49 = vpop.xlane.xlu1 %1095 }
 0x289   :  { %v1097_v50 = vsub.f32 0.0, %v1096_v49 }
 0x28b   :  { %1099 = vst.msk [vmem:[%s1885_s5] sm:$0x3] %vm1098_vm2, %v1097_v50 }
 0x28c   :  { %1319 = dma.done.wait [#allocation4], 32  }
 0x28d   :  { %1320 = vsyncadd [#allocation4], 4294967264 }
 0x28e   :  { %1120 = vsyncpa [#allocation3], 1 }
 0x28f   :  { %1121 = vsyncpa [#allocation6], 1 }
 0x290   :  { %1122 = vsyncpa [#allocation4], 1 }

</bundles_post_ra>
